<compile_context>
chip_gen: v7x
topology: tpu7x:2x2x1
jax: 0.10.0
libtpu: 0.0.40
codegen_flags: <defaults>
</compile_context>

<pallas_src>
import jax
import jax.numpy as jnp
from jax import lax
from jax.experimental import pallas as pl
from jax.experimental.pallas import tpu as pltpu


def _round_up(x, m):
    return (x + m - 1) // m * m


def _tpu_vmem_capacity():
    """Per-core VMEM capacity in bytes (falls back to 128 MiB)."""
    try:
        return int(pltpu.get_tpu_info().vmem_capacity_bytes)
    except Exception:
        return 128 << 20


def _tile_vmem_bytes(rows_out, rows_halo, cin, cp, c_it, o_it, slack):
    """Per-grid-step VMEM footprint estimate for one row tile."""
    in_blocks = 2 * (rows_out + rows_halo) * cin * c_it    # double-buffered in
    out_blocks = 2 * rows_out * cp * o_it                  # double-buffered out
    weights = 2 * 9 * cin * cp * c_it                      # weight blocks
    bias = 2 * cp * 4
    slab = (rows_out + rows_halo + slack) * cin * c_it     # scratch slab
    acc = rows_out * cp * 4                                # f32 accumulator
    temps = 3 * rows_out * cp * 4                          # live matmul partials
    return in_blocks + out_blocks + weights + bias + slab + acc + temps


def _pick_tile_rows(h_eff, w_pad, cin, cp, c_it, o_it, slack, budget_bytes,
                    min_tiles=1):
    """Largest even divisor of h_eff whose per-tile footprint fits the budget,
    subject to producing at least `min_tiles` row tiles (v7x dual-TC)."""
    best = 2
    for th in range(2, h_eff + 1, 2):
        if h_eff % th:
            continue
        if h_eff // th < min_tiles:
            continue
        if _tile_vmem_bytes(th * w_pad, 2 * w_pad, cin, cp,
                            c_it, o_it, slack) <= budget_bytes:
            best = th
    return best


def _make_vgg_kernel(w_pad, rows_out, rows_halo, slack, compute_dtype):
    """Builds the per-tile kernel.

    Refs:
      m_ref : (1, TH*Wp, Cin)     main padded rows of this row tile (compute dt)
      h_ref : (1, 2*Wp, Cin)      2-row halo (first rows of the next block)
      w_ref : (9, Cin, Cp)        BN-folded weights, tap-major (1x1 fused in)
      b_ref : (1, Cp)             fused bias (f32, lane-padded)
      o_ref : (1, TH*Wp, Cp)      output rows (incl. padded garbage columns)
      slab  : VMEM (TH*Wp + 2*Wp + slack, Cin)  contiguous padded-row slab
      acc   : VMEM (TH*Wp, Cp) f32 accumulator
    """

    def kernel(m_ref, h_ref, w_ref, b_ref, o_ref, slab_ref, acc_ref):
        cin = m_ref.shape[-1]

        # Assemble the contiguous (TH+2)-row slab in persistent VMEM scratch.
        # All three stores are sublane-aligned (offsets are multiples of the
        # compute-dtype pack width because w_pad is).  The slack rows only
        # feed padded output columns that the wrapper drops.
        slab_ref[pl.ds(0, rows_out), :] = m_ref[0]
        slab_ref[pl.ds(rows_out, rows_halo), :] = h_ref[0]
        slab_ref[pl.ds(rows_out + rows_halo, slack), :] = jnp.zeros(
            (slack, cin), compute_dtype)

        # 3x3 conv = 3 row groups of 3 shifted matmuls.  The kx taps of each
        # ky row are summed in registers (straight off the MXU result path),
        # so the f32 VMEM accumulator sees only 3 read-modify-write passes.
        for ky in range(3):
            base = ky * w_pad                      # static, sublane-aligned
            part = None
            for kx in range(3):
                lhs = slab_ref[pl.ds(base + kx, rows_out), :]
                q = jnp.dot(lhs, w_ref[3 * ky + kx],
                            preferred_element_type=jnp.float32)
                part = q if part is None else part + q
            if ky == 0:
                acc_ref[...] = part                # no separate zero pass
            else:
                acc_ref[...] += part

        y = acc_ref[...] + b_ref[...]              # fused bias
        o_ref[...] = jnp.maximum(y, 0.0).astype(o_ref.dtype)[None]   # relu

    return kernel


def vgg_block_forward(x_nchw, w3, bn1, w1, bn2, eps=1e-5, *,
                      tile_rows=None, compute_dtype=jnp.bfloat16):
    """Eval-mode VGGBlock forward.

    x_nchw: (N, Cin, H, W) float32 (PyTorch layout).
    w3: (3,3,Cin,Cout) HWIO, w1: (1,1,Cin,Cout) HWIO.
    bn1/bn2: dicts with gamma, beta, mean, var of shape (Cout,).
    """
    N, Cin, H, W = x_nchw.shape
    Cout = w3.shape[-1]
    out_dtype = x_nchw.dtype

    # ---- fold BN into each conv, then fold the 1x1 into the 3x3 centre ----
    std3 = jnp.sqrt(bn1["var"] + eps)
    w3_f = w3 * (bn1["gamma"] / std3)[None, None, None, :]
    b3 = bn1["beta"] - bn1["mean"] * bn1["gamma"] / std3
    std1 = jnp.sqrt(bn2["var"] + eps)
    w1_f = w1 * (bn2["gamma"] / std1)[None, None, None, :]
    b1 = bn2["beta"] - bn2["mean"] * bn2["gamma"] / std1
    w_eq = w3_f.at[1, 1].add(w1_f[0, 0])                    # (3,3,Cin,Cout)

    # ---- lane-dense output: pad Cout up to a multiple of 128 ----
    Cp = _round_up(Cout, 128)
    w9 = jnp.zeros((9, Cin, Cp), compute_dtype)
    w9 = w9.at[:, :, :Cout].set(w_eq.reshape(9, Cin, Cout).astype(compute_dtype))
    b_eq = jnp.zeros((1, Cp), jnp.float32)
    b_eq = b_eq.at[:, :Cout].set((b3 + b1).reshape(1, Cout).astype(jnp.float32))

    # ---- layout prep: NCHW -> NHWC, pad, flatten rows, cast to compute dt ----
    # TODO(synk): in an NHWC end-to-end model the transposes disappear and the
    # zero padding could be folded into the kernel with boundary masking.
    c_it = jnp.dtype(compute_dtype).itemsize
    o_it = jnp.dtype(out_dtype).itemsize
    sub = (8 * 4) // c_it             # sublane pack width: 8 (f32) / 16 (bf16)
    w_pad = _round_up(W + 2, sub)
    assert w_pad >= W + 2, "padded width must cover the kx=0..2 taps"
    h_extra = H % 2                   # tile rows in pairs -> pad H to even
    h_eff = H + h_extra
    x_nhwc = jnp.transpose(x_nchw, (0, 2, 3, 1))
    x_p = jnp.pad(x_nhwc, ((0, 0), (1, 1 + h_extra),
                           (1, w_pad - W - 1), (0, 0)))
    x_flat = x_p.reshape(N, (h_eff + 2) * w_pad, Cin).astype(compute_dtype)

    # ---- per-generation VMEM budget & tile choice ----
    cap = _tpu_vmem_capacity()
    small_vmem = cap <= (64 << 20)    # v7x-like: 64 MiB per TC, 2 TCs per chip
    tile_budget = (9 << 20) if small_vmem else (28 << 20)
    limit_cap = min((3 * cap) // 4, 96 << 20)   # ~48 MiB on v7x, 96 MiB else

    if tile_rows is None:
        # On dual-TC parts keep >= 2 grid steps when the batch axis is 1.
        min_tiles = 2 if (small_vmem and N == 1 and h_eff >= 4) else 1
        tile_rows = _pick_tile_rows(h_eff, w_pad, Cin, Cp, c_it, o_it, sub,
                                    tile_budget, min_tiles)
    assert tile_rows % 2 == 0 and h_eff % tile_rows == 0, \
        "tile_rows must be even and divide the (even-padded) height"

    rows_out = tile_rows * w_pad
    rows_halo = 2 * w_pad
    n_tiles = h_eff // tile_rows
    half_tile = tile_rows // 2

    est = _tile_vmem_bytes(rows_out, rows_halo, Cin, Cp, c_it, o_it, sub)
    if est > limit_cap:
        raise ValueError(
            f"VGGBlock tile ({tile_rows} rows, ~{est >> 20} MiB) exceeds the "
            f"VMEM budget ({limit_cap >> 20} MiB) on this TPU generation; "
            "pass a smaller tile_rows.")
    vmem_limit = int(min(max(2 * est, 32 << 20), limit_cap))

    kernel = _make_vgg_kernel(w_pad, rows_out, rows_halo, sub, compute_dtype)

    out_flat = pl.pallas_call(
        kernel,
        out_shape=jax.ShapeDtypeStruct((N, h_eff * w_pad, Cp), out_dtype),
        grid_spec=pltpu.PrefetchScalarGridSpec(
            num_scalar_prefetch=0,
            grid=(N, n_tiles),
            in_specs=[
                # TH padded rows of this tile.
                pl.BlockSpec((1, rows_out, Cin), lambda n, i: (n, i, 0)),
                # 2-row halo = first rows of the next row block (same array).
                pl.BlockSpec((1, rows_halo, Cin),
                             lambda n, i: (n, (i + 1) * half_tile, 0)),
                # TODO(synk): these two specs are grid-invariant; mark them
                # pipeline_mode=pl.Buffered(1) once single-buffered pipelining
                # of pallas_call operands is verified on the target toolchain.
                pl.BlockSpec((9, Cin, Cp), lambda n, i: (0, 0, 0)),
                pl.BlockSpec((1, Cp), lambda n, i: (0, 0)),
            ],
            out_specs=pl.BlockSpec((1, rows_out, Cp), lambda n, i: (n, i, 0)),
            scratch_shapes=[
                pltpu.VMEM((rows_out + rows_halo + sub, Cin), compute_dtype),
                pltpu.VMEM((rows_out, Cp), jnp.float32),
            ],
        ),
        compiler_params=pltpu.CompilerParams(
            dimension_semantics=("parallel", "parallel"),
            vmem_limit_bytes=vmem_limit),
    )(x_flat, x_flat, w9, b_eq)

    # Drop padded garbage columns / rows / channels and go back to NCHW.
    out = out_flat.reshape(N, h_eff, w_pad, Cp)[:, :H, :W, :Cout]
    return jnp.transpose(out, (0, 3, 1, 2))


def _reference_forward(x_nchw, w3, bn1, w1, bn2, eps=1e-5):
    """Pure-JAX reference matching the PyTorch eval-mode forward."""
    def conv(x, w_hwio, pad):
        return lax.conv_general_dilated(
            x, w_hwio, window_strides=(1, 1), padding=[(pad, pad), (pad, pad)],
            dimension_numbers=("NCHW", "HWIO", "NCHW"))

    def bn(y, p):
        scale = p["gamma"] / jnp.sqrt(p["var"] + eps)
        return (y - p["mean"][None, :, None, None]) * scale[None, :, None, None] \
               + p["beta"][None, :, None, None]

    y = bn(conv(x_nchw, w3, 1), bn1) + bn(conv(x_nchw, w1, 0), bn2)
    return jnp.maximum(y, 0.0)


if __name__ == "__main__":
    key = jax.random.PRNGKey(0)
    N, Cin, Cout, H, W = 2, 4, 8, 16, 16

    ks = jax.random.split(key, 10)
    x = jax.random.normal(ks[0], (N, Cin, H, W), dtype=jnp.float32)
    w3 = 0.1 * jax.random.normal(ks[1], (3, 3, Cin, Cout), dtype=jnp.float32)
    w1 = 0.1 * jax.random.normal(ks[2], (1, 1, Cin, Cout), dtype=jnp.float32)
    bn1 = dict(
        gamma=1.0 + 0.1 * jax.random.normal(ks[3], (Cout,), dtype=jnp.float32),
        beta=0.1 * jax.random.normal(ks[4], (Cout,), dtype=jnp.float32),
        mean=0.1 * jax.random.normal(ks[5], (Cout,), dtype=jnp.float32),
        var=jnp.abs(jax.random.normal(ks[6], (Cout,), dtype=jnp.float32)) + 0.5,
    )
    bn2 = dict(
        gamma=1.0 + 0.1 * jax.random.normal(ks[7], (Cout,), dtype=jnp.float32),
        beta=0.1 * jax.random.normal(ks[8], (Cout,), dtype=jnp.float32),
        mean=0.1 * jax.random.normal(ks[9], (Cout,), dtype=jnp.float32),
        var=jnp.abs(jax.random.normal(ks[0], (Cout,), dtype=jnp.float32)) + 0.5,
    )

    ref = jax.block_until_ready(_reference_forward(x, w3, bn1, w1, bn2))

    # 1) f32 compute, auto row tile (exercises the tile-picker path).
    out_f32 = jax.block_until_ready(
        vgg_block_forward(x, w3, bn1, w1, bn2, compute_dtype=jnp.float32))
    assert out_f32.shape == (N, Cout, H, W)
    err = float(jnp.max(jnp.abs(out_f32 - ref)))
    assert err < 1e-3, f"f32/auto-tile max abs err = {err}"

    # 2) f32 compute, forced multi-tile grid -> exercises the halo path.
    out_tiled = jax.block_until_ready(
        vgg_block_forward(x, w3, bn1, w1, bn2, compute_dtype=jnp.float32,
                          tile_rows=4))
    err = float(jnp.max(jnp.abs(out_tiled - ref)))
    assert err < 1e-3, f"f32/tiled max abs err = {err}"

    # 3) bf16 matmul operands (f32 accumulation), multi-tile.
    out_bf16 = jax.block_until_ready(
        vgg_block_forward(x, w3, bn1, w1, bn2, compute_dtype=jnp.bfloat16,
                          tile_rows=8))
    err = float(jnp.max(jnp.abs(out_bf16 - ref)))
    assert err < 5e-2, f"bf16 max abs err = {err}"

    print("KERNEL_OK")
</pallas_src>

<mosaic_0001>
module attributes {stable_mosaic.version = 11 : i64} {
  func.func @kernel(%arg0: i32, %arg1: i32, %arg2: memref<1x384x4xf32, #tpu.memory_space<vmem>>, %arg3: memref<1x48x4xf32, #tpu.memory_space<vmem>>, %arg4: memref<9x4x128xf32, #tpu.memory_space<vmem>>, %arg5: memref<1x128xf32, #tpu.memory_space<vmem>>, %arg6: memref<1x384x128xf32, #tpu.memory_space<vmem>>, %arg7: memref<440x4xf32, #tpu.memory_space<vmem>>, %arg8: memref<384x128xf32, #tpu.memory_space<vmem>>) attributes {dimension_semantics = [#tpu.dimension_semantics<parallel>, #tpu.dimension_semantics<parallel>], iteration_bounds = array<i64: 2, 1>, scalar_prefetch = 0 : i64, scratch_operands = 2 : i64, tpu.core_type = #tpu.core_type<tc>, window_params = [{transform_indices = @transform_0, window_bounds = array<i64: 1, 384, 4>}, {transform_indices = @transform_1, window_bounds = array<i64: 1, 48, 4>}, {pipeline_mode = #tpu.pipeline_mode<synchronous>, transform_indices = @transform_2, window_bounds = array<i64: 9, 4, 128>}, {pipeline_mode = #tpu.pipeline_mode<synchronous>, transform_indices = @transform_3, window_bounds = array<i64: 1, 128>}, {transform_indices = @transform_4, window_bounds = array<i64: 1, 384, 128>}]} {
    %c0 = arith.constant 0 : index
    %c0_0 = arith.constant 0 : index
    %c0_1 = arith.constant 0 : index
    %0 = vector.load %arg2[%c0, %c0_0, %c0_1] : memref<1x384x4xf32, #tpu.memory_space<vmem>>, vector<1x384x4xf32>
    %1 = vector.shape_cast %0 : vector<1x384x4xf32> to vector<384x4xf32>
    %c0_2 = arith.constant 0 : index
    %c0_3 = arith.constant 0 : index
    %2 = vector.load %arg7[%c0_2, %c0_3] : memref<440x4xf32, #tpu.memory_space<vmem>>, vector<384x4xf32>
    tpu.vector_store %arg7[%c0_2, %c0_3], %1 {strides = array<i32>} : memref<440x4xf32, #tpu.memory_space<vmem>>, vector<384x4xf32>,
    %c0_4 = arith.constant 0 : index
    %c0_5 = arith.constant 0 : index
    %c0_6 = arith.constant 0 : index
    %3 = vector.load %arg3[%c0_4, %c0_5, %c0_6] : memref<1x48x4xf32, #tpu.memory_space<vmem>>, vector<1x48x4xf32>
    %4 = vector.shape_cast %3 : vector<1x48x4xf32> to vector<48x4xf32>
    %c384 = arith.constant 384 : index
    %c0_7 = arith.constant 0 : index
    %5 = vector.load %arg7[%c384, %c0_7] : memref<440x4xf32, #tpu.memory_space<vmem>>, vector<48x4xf32>
    tpu.vector_store %arg7[%c384, %c0_7], %4 {strides = array<i32>} : memref<440x4xf32, #tpu.memory_space<vmem>>, vector<48x4xf32>,
    %cst = arith.constant 0.000000e+00 : f32
    %6 = vector.broadcast %cst : f32 to vector<8x4xf32>
    %c432 = arith.constant 432 : index
    %c0_8 = arith.constant 0 : index
    %7 = vector.load %arg7[%c432, %c0_8] : memref<440x4xf32, #tpu.memory_space<vmem>>, vector<8x4xf32>
    tpu.vector_store %arg7[%c432, %c0_8], %6 {strides = array<i32>} : memref<440x4xf32, #tpu.memory_space<vmem>>, vector<8x4xf32>,
    %c0_9 = arith.constant 0 : index
    %c0_10 = arith.constant 0 : index
    %8 = vector.load %arg7[%c0_9, %c0_10] : memref<440x4xf32, #tpu.memory_space<vmem>>, vector<384x4xf32>
    %c0_11 = arith.constant 0 : index
    %c0_12 = arith.constant 0 : index
    %c0_13 = arith.constant 0 : index
    %9 = vector.load %arg4[%c0_11, %c0_12, %c0_13] : memref<9x4x128xf32, #tpu.memory_space<vmem>>, vector<1x4x128xf32>
    %10 = vector.shape_cast %9 : vector<1x4x128xf32> to vector<4x128xf32>
    %cst_14 = arith.constant dense<0.000000e+00> : vector<384x128xf32>
    %11 = tpu.matmul %8, %10, %cst_14 {dimension_numbers = #tpu.dot_dimension_numbers<[1], [0], [0], [1], [0, 0, 1, 1], [], []>} : vector<384x4xf32>, vector<4x128xf32>, vector<384x128xf32> -> vector<384x128xf32>
    %c1 = arith.constant 1 : index
    %c0_15 = arith.constant 0 : index
    %12 = vector.load %arg7[%c1, %c0_15] : memref<440x4xf32, #tpu.memory_space<vmem>>, vector<384x4xf32>
    %c1_16 = arith.constant 1 : index
    %c0_17 = arith.constant 0 : index
    %c0_18 = arith.constant 0 : index
    %13 = vector.load %arg4[%c1_16, %c0_17, %c0_18] : memref<9x4x128xf32, #tpu.memory_space<vmem>>, vector<1x4x128xf32>
    %14 = vector.shape_cast %13 : vector<1x4x128xf32> to vector<4x128xf32>
    %cst_19 = arith.constant dense<0.000000e+00> : vector<384x128xf32>
    %15 = tpu.matmul %12, %14, %cst_19 {dimension_numbers = #tpu.dot_dimension_numbers<[1], [0], [0], [1], [0, 0, 1, 1], [], []>} : vector<384x4xf32>, vector<4x128xf32>, vector<384x128xf32> -> vector<384x128xf32>
    %16 = arith.addf %11, %15 : vector<384x128xf32>
    %c2 = arith.constant 2 : index
    %c0_20 = arith.constant 0 : index
    %17 = vector.load %arg7[%c2, %c0_20] : memref<440x4xf32, #tpu.memory_space<vmem>>, vector<384x4xf32>
    %c2_21 = arith.constant 2 : index
    %c0_22 = arith.constant 0 : index
    %c0_23 = arith.constant 0 : index
    %18 = vector.load %arg4[%c2_21, %c0_22, %c0_23] : memref<9x4x128xf32, #tpu.memory_space<vmem>>, vector<1x4x128xf32>
    %19 = vector.shape_cast %18 : vector<1x4x128xf32> to vector<4x128xf32>
    %cst_24 = arith.constant dense<0.000000e+00> : vector<384x128xf32>
    %20 = tpu.matmul %17, %19, %cst_24 {dimension_numbers = #tpu.dot_dimension_numbers<[1], [0], [0], [1], [0, 0, 1, 1], [], []>} : vector<384x4xf32>, vector<4x128xf32>, vector<384x128xf32> -> vector<384x128xf32>
    %21 = arith.addf %16, %20 : vector<384x128xf32>
    %c0_25 = arith.constant 0 : index
    %c0_26 = arith.constant 0 : index
    %22 = vector.load %arg8[%c0_25, %c0_26] : memref<384x128xf32, #tpu.memory_space<vmem>>, vector<384x128xf32>
    tpu.vector_store %arg8[%c0_25, %c0_26], %21 {strides = array<i32>} : memref<384x128xf32, #tpu.memory_space<vmem>>, vector<384x128xf32>,
    %c24 = arith.constant 24 : index
    %c0_27 = arith.constant 0 : index
    %23 = vector.load %arg7[%c24, %c0_27] : memref<440x4xf32, #tpu.memory_space<vmem>>, vector<384x4xf32>
    %c3 = arith.constant 3 : index
    %c0_28 = arith.constant 0 : index
    %c0_29 = arith.constant 0 : index
    %24 = vector.load %arg4[%c3, %c0_28, %c0_29] : memref<9x4x128xf32, #tpu.memory_space<vmem>>, vector<1x4x128xf32>
    %25 = vector.shape_cast %24 : vector<1x4x128xf32> to vector<4x128xf32>
    %cst_30 = arith.constant dense<0.000000e+00> : vector<384x128xf32>
    %26 = tpu.matmul %23, %25, %cst_30 {dimension_numbers = #tpu.dot_dimension_numbers<[1], [0], [0], [1], [0, 0, 1, 1], [], []>} : vector<384x4xf32>, vector<4x128xf32>, vector<384x128xf32> -> vector<384x128xf32>
    %c25 = arith.constant 25 : index
    %c0_31 = arith.constant 0 : index
    %27 = vector.load %arg7[%c25, %c0_31] : memref<440x4xf32, #tpu.memory_space<vmem>>, vector<384x4xf32>
    %c4 = arith.constant 4 : index
    %c0_32 = arith.constant 0 : index
    %c0_33 = arith.constant 0 : index
    %28 = vector.load %arg4[%c4, %c0_32, %c0_33] : memref<9x4x128xf32, #tpu.memory_space<vmem>>, vector<1x4x128xf32>
    %29 = vector.shape_cast %28 : vector<1x4x128xf32> to vector<4x128xf32>
    %cst_34 = arith.constant dense<0.000000e+00> : vector<384x128xf32>
    %30 = tpu.matmul %27, %29, %cst_34 {dimension_numbers = #tpu.dot_dimension_numbers<[1], [0], [0], [1], [0, 0, 1, 1], [], []>} : vector<384x4xf32>, vector<4x128xf32>, vector<384x128xf32> -> vector<384x128xf32>
    %31 = arith.addf %26, %30 : vector<384x128xf32>
    %c26 = arith.constant 26 : index
    %c0_35 = arith.constant 0 : index
    %32 = vector.load %arg7[%c26, %c0_35] : memref<440x4xf32, #tpu.memory_space<vmem>>, vector<384x4xf32>
    %c5 = arith.constant 5 : index
    %c0_36 = arith.constant 0 : index
    %c0_37 = arith.constant 0 : index
    %33 = vector.load %arg4[%c5, %c0_36, %c0_37] : memref<9x4x128xf32, #tpu.memory_space<vmem>>, vector<1x4x128xf32>
    %34 = vector.shape_cast %33 : vector<1x4x128xf32> to vector<4x128xf32>
    %cst_38 = arith.constant dense<0.000000e+00> : vector<384x128xf32>
    %35 = tpu.matmul %32, %34, %cst_38 {dimension_numbers = #tpu.dot_dimension_numbers<[1], [0], [0], [1], [0, 0, 1, 1], [], []>} : vector<384x4xf32>, vector<4x128xf32>, vector<384x128xf32> -> vector<384x128xf32>
    %36 = arith.addf %31, %35 : vector<384x128xf32>
    %c0_39 = arith.constant 0 : index
    %c0_40 = arith.constant 0 : index
    %37 = vector.load %arg8[%c0_39, %c0_40] : memref<384x128xf32, #tpu.memory_space<vmem>>, vector<384x128xf32>
    %38 = arith.addf %37, %36 : vector<384x128xf32>
    %c0_41 = arith.constant 0 : index
    %c0_42 = arith.constant 0 : index
    %39 = vector.load %arg8[%c0_41, %c0_42] : memref<384x128xf32, #tpu.memory_space<vmem>>, vector<384x128xf32>
    tpu.vector_store %arg8[%c0_41, %c0_42], %38 {strides = array<i32>} : memref<384x128xf32, #tpu.memory_space<vmem>>, vector<384x128xf32>,
    %c48 = arith.constant 48 : index
    %c0_43 = arith.constant 0 : index
    %40 = vector.load %arg7[%c48, %c0_43] : memref<440x4xf32, #tpu.memory_space<vmem>>, vector<384x4xf32>
    %c6 = arith.constant 6 : index
    %c0_44 = arith.constant 0 : index
    %c0_45 = arith.constant 0 : index
    %41 = vector.load %arg4[%c6, %c0_44, %c0_45] : memref<9x4x128xf32, #tpu.memory_space<vmem>>, vector<1x4x128xf32>
    %42 = vector.shape_cast %41 : vector<1x4x128xf32> to vector<4x128xf32>
    %cst_46 = arith.constant dense<0.000000e+00> : vector<384x128xf32>
    %43 = tpu.matmul %40, %42, %cst_46 {dimension_numbers = #tpu.dot_dimension_numbers<[1], [0], [0], [1], [0, 0, 1, 1], [], []>} : vector<384x4xf32>, vector<4x128xf32>, vector<384x128xf32> -> vector<384x128xf32>
    %c49 = arith.constant 49 : index
    %c0_47 = arith.constant 0 : index
    %44 = vector.load %arg7[%c49, %c0_47] : memref<440x4xf32, #tpu.memory_space<vmem>>, vector<384x4xf32>
    %c7 = arith.constant 7 : index
    %c0_48 = arith.constant 0 : index
    %c0_49 = arith.constant 0 : index
    %45 = vector.load %arg4[%c7, %c0_48, %c0_49] : memref<9x4x128xf32, #tpu.memory_space<vmem>>, vector<1x4x128xf32>
    %46 = vector.shape_cast %45 : vector<1x4x128xf32> to vector<4x128xf32>
    %cst_50 = arith.constant dense<0.000000e+00> : vector<384x128xf32>
    %47 = tpu.matmul %44, %46, %cst_50 {dimension_numbers = #tpu.dot_dimension_numbers<[1], [0], [0], [1], [0, 0, 1, 1], [], []>} : vector<384x4xf32>, vector<4x128xf32>, vector<384x128xf32> -> vector<384x128xf32>
    %48 = arith.addf %43, %47 : vector<384x128xf32>
    %c50 = arith.constant 50 : index
    %c0_51 = arith.constant 0 : index
    %49 = vector.load %arg7[%c50, %c0_51] : memref<440x4xf32, #tpu.memory_space<vmem>>, vector<384x4xf32>
    %c8 = arith.constant 8 : index
    %c0_52 = arith.constant 0 : index
    %c0_53 = arith.constant 0 : index
    %50 = vector.load %arg4[%c8, %c0_52, %c0_53] : memref<9x4x128xf32, #tpu.memory_space<vmem>>, vector<1x4x128xf32>
    %51 = vector.shape_cast %50 : vector<1x4x128xf32> to vector<4x128xf32>
    %cst_54 = arith.constant dense<0.000000e+00> : vector<384x128xf32>
    %52 = tpu.matmul %49, %51, %cst_54 {dimension_numbers = #tpu.dot_dimension_numbers<[1], [0], [0], [1], [0, 0, 1, 1], [], []>} : vector<384x4xf32>, vector<4x128xf32>, vector<384x128xf32> -> vector<384x128xf32>
    %53 = arith.addf %48, %52 : vector<384x128xf32>
    %c0_55 = arith.constant 0 : index
    %c0_56 = arith.constant 0 : index
    %54 = vector.load %arg8[%c0_55, %c0_56] : memref<384x128xf32, #tpu.memory_space<vmem>>, vector<384x128xf32>
    %55 = arith.addf %54, %53 : vector<384x128xf32>
    %c0_57 = arith.constant 0 : index
    %c0_58 = arith.constant 0 : index
    %56 = vector.load %arg8[%c0_57, %c0_58] : memref<384x128xf32, #tpu.memory_space<vmem>>, vector<384x128xf32>
    tpu.vector_store %arg8[%c0_57, %c0_58], %55 {strides = array<i32>} : memref<384x128xf32, #tpu.memory_space<vmem>>, vector<384x128xf32>,
    %c0_59 = arith.constant 0 : index
    %c0_60 = arith.constant 0 : index
    %57 = vector.load %arg8[%c0_59, %c0_60] : memref<384x128xf32, #tpu.memory_space<vmem>>, vector<384x128xf32>
    %c0_61 = arith.constant 0 : index
    %c0_62 = arith.constant 0 : index
    %58 = vector.load %arg5[%c0_61, %c0_62] : memref<1x128xf32, #tpu.memory_space<vmem>>, vector<1x128xf32>
    %59 = vector.broadcast %58 : vector<1x128xf32> to vector<384x128xf32>
    %60 = arith.addf %57, %59 : vector<384x128xf32>
    %cst_63 = arith.constant 0.000000e+00 : f32
    %61 = vector.broadcast %cst_63 : f32 to vector<384x128xf32>
    %62 = arith.maximumf %60, %61 : vector<384x128xf32>
    %63 = vector.shape_cast %62 : vector<384x128xf32> to vector<1x384x128xf32>
    %c0_64 = arith.constant 0 : index
    %c0_65 = arith.constant 0 : index
    %c0_66 = arith.constant 0 : index
    %64 = vector.load %arg6[%c0_64, %c0_65, %c0_66] : memref<1x384x128xf32, #tpu.memory_space<vmem>>, vector<1x384x128xf32>
    tpu.vector_store %arg6[%c0_64, %c0_65, %c0_66], %63 {strides = array<i32>} : memref<1x384x128xf32, #tpu.memory_space<vmem>>, vector<1x384x128xf32>,
    return
  }
  func.func @transform_0(%arg0: i32, %arg1: i32) -> (i32, i32, i32) {
    %c0_i32 = arith.constant 0 : i32
    %c0_i32_0 = arith.constant 0 : i32
    return %arg0, %arg1, %c0_i32 : i32, i32, i32
  }
  func.func @transform_1(%arg0: i32, %arg1: i32) -> (i32, i32, i32) {
    %c1_i32 = arith.constant 1 : i32
    %0 = arith.addi %arg1, %c1_i32 : i32
    %c8_i32 = arith.constant 8 : i32
    %1 = arith.muli %0, %c8_i32 : i32
    %c0_i32 = arith.constant 0 : i32
    %c0_i32_0 = arith.constant 0 : i32
    return %arg0, %1, %c0_i32 : i32, i32, i32
  }
  func.func @transform_2(%arg0: i32, %arg1: i32) -> (i32, i32, i32) {
    %c0_i32 = arith.constant 0 : i32
    %c0_i32_0 = arith.constant 0 : i32
    %c0_i32_1 = arith.constant 0 : i32
    %c0_i32_2 = arith.constant 0 : i32
    return %c0_i32, %c0_i32_0, %c0_i32_1 : i32, i32, i32
  }
  func.func @transform_3(%arg0: i32, %arg1: i32) -> (i32, i32) {
    %c0_i32 = arith.constant 0 : i32
    %c0_i32_0 = arith.constant 0 : i32
    %c0_i32_1 = arith.constant 0 : i32
    return %c0_i32, %c0_i32_0 : i32, i32
  }
  func.func @transform_4(%arg0: i32, %arg1: i32) -> (i32, i32, i32) {
    %c0_i32 = arith.constant 0 : i32
    %c0_i32_0 = arith.constant 0 : i32
    return %arg0, %arg1, %c0_i32 : i32, i32, i32
  }
}

</mosaic_0001>

<bundles_post_ra>
// kernel: tpu_custom_call.1
= control target key start
LH: loop header
LB: loop body
LE: loop exit
PB: predicated region body
PF: predicated region fallthrough
CT: control target
= control target key end

     0   :  { %9 = vsyncpa [#allocation5], 0  ;;  %s9321_s0 = inlined_call_operand.vmem [shape: f32[2,432,4], index: 0, kind: input, shape index: {}]   ;;  %s9322_s1 = inlined_call_operand.vmem [shape: f32[2,432,4], index: 1, kind: input, shape index: {}]   ;;  %s9323_s2 = inlined_call_operand.vmem [shape: f32[9,4,128], index: 2, kind: input, shape index: {}]   ;;  %s9324_s3 = inlined_call_operand.vmem [shape: f32[1,128], index: 3, kind: input, shape index: {}]   ;;  %s9325_s4 = inlined_call_operand.hbm [shape: f32[2,384,128], index: 4, kind: output, shape index: {}]  }
   0x1   :  { %11 = vsyncpa [#allocation5 + $0x1], 0  ;;  %s7845_s15 = smov 0   ;;  %s7847_s16 = smov 0  }
   0x2   :  { %s7849_s17 = smov 0   ;;  %s7851_s18 = smov 0  }
   0x3   :  { %s7853_s19 = smov 0   ;;  %s7855_s20 = smov 0  }
   0x4 LB: > { %s5717_s21 = sadd.s32 4294967295, %s7814_s20   ;;  %s5718_s22 = sadd.s32 4294967294, %s7814_s20   ;;  %s7814_s20 = sphi %s7855_s20, %s17_s20   ;;  %s7810_s19 = sphi %s7853_s19, %s9446_s19   ;;  %s7806_s18 = sphi %s7851_s18, %s9445_s18   ;;  %s7802_s17 = sphi %s7849_s17, %s9444_s17   ;;  %s7798_s16 = sphi %s7847_s16, %s9443_s16   ;;  %s7794_s15 = sphi %s7845_s15, %s9442_s15  }
   0x5   : > { %s29_s23 = sadd.s32 1, %s7810_s19  ;;  %s140_s24 = sadd.s32 1, %s7802_s17 }
   0x6   : > { %p31_p0 = scmp.ge.s32.totalorder %s29_s23, 2  ;;  %p150_p1 = scmp.ne.s32.totalorder %s7802_s17, %s7798_s16 }
   0x7   : > { %p151_p2 = scmp.eq.s32.totalorder %s5717_s21, 1  ;;  %p156_p3 = scmp.ne.s32.totalorder %s7798_s16, %s7794_s15 }
   0x8   : > { %s9448_s23 = smov (%p31_p0, %s29_s23), 0  ;;  %p157_p5 = scmp.eq.s32.totalorder %s5718_s22, 1 }
   0x9   : > { %p7885_p4 = por %p151_p2, %p150_p1  ;;  %s135_s26 = ssub.s32 %s7810_s19, %s9448_s23 }
   0xa   : > { %p5721_p6 = scmp.ge.s32.totalorder %s7814_s20, 1  ;;  %p138_p7 = scmp.eq.s32.totalorder %s135_s26, 0 }
   0xb   : > { %p7892_p8 = por %p157_p5, %p156_p3  ;;  %p219_p9 = scmp.lt.s32.totalorder %s7814_s20, 3 }
   0xc   : > { %s7898_s28 = scalar_select %p138_p7, %s7802_s17, %s140_s24  }
   0xd   : > { %p220_p10 = pnand %p5721_p6, %p219_p9 }
   0xf   : > { %223 = sbr.rel (%p220_p10) target bundleno = 705 (0x2c1), region = 36 }
  0x16   : > { %v5724_v0 = vld [vmem:[%s9323_s2 + $0x4] sm:$0xf]  ;;  %vm650_vm0 = vcmask 1043456   ;;  %v7906_v1 = vld [vmem:[%s9323_s2 + $0xc] sm:$0xf]  ;;  %p269_p11 = scmp.lt.s32.totalorder %s7806_s18, 1 }
  0x17   : > { %6620 = vmatprep.subr.msk.mxu1 %vm650_vm0, %v5724_v0  ;;  %6916 = vmatprep.subr.msk.mxu0 %vm650_vm0, %v7906_v1  ;;  %v7915_v2 = vld [vmem:[%s9323_s2] sm:$0xf]  ;;  %v7920_v3 = vld [vmem:[%s9323_s2 + $0x14] sm:$0xf]  ;;  %vm345_vm1 = vcmask 31744   ;;  %s261_s22 = sand.u32 1, %s7798_s16  }
  0x18   : > { %6621 = vmatpush3.msk.msra.mxu1 %vm650_vm0, %v5724_v0  ;;  %6917 = vmatpush3.msk.msra.mxu0 %vm650_vm0, %v7906_v1  ;;  %s7926_s11 = scalar_select %p269_p11, %s7806_s18, 1  ;;  %v8005_v35 = vld [vmem:[%s9323_s2 + $0x1c] sm:$0xf]  ;;  %v8010_v36 = vld [vmem:[%s9323_s2 + $0x8] sm:$0xf] }
  0x19   : > { %6694 = vmatprep.subr.msk.mxu1 %vm650_vm0, %v7915_v2  ;;  %6990 = vmatprep.subr.msk.mxu0 %vm650_vm0, %v7920_v3  ;;  %s7672_s24 = smul.u32 384, %s261_s22 }
  0x1a   : > { %s7673_s12 = smul.u32 432, %s7926_s11  ;;  %s7817_s11 = smov [#allocation4]  }
  0x1b   : > { %s7675_s5 = smul.u32 6144, %s7806_s18  ;;  %s9275_s18 = scalar_lea.sflag [#allocation5], %s261_s22 }
  0x1c   : > { %s7938_s21 = scalar_lea.vmem %s9321_s0, %s7673_s12  ;;  %s6178_s30 = sadd.s32 384, %s7673_s12 }
  0x1d   : > { %v297_v4 = vld [vmem:[%s7938_s21] sm:$0xff]  ;;  %v298_v5 = vld [vmem:[%s7938_s21 + $0x8] sm:$0xff]  ;;  %v300_v6 = vld [vmem:[%s7938_s21 + $0x18] sm:$0xff]  ;;  %s8178_s7 = scalar_lea.vmem %s9322_s1, %s6178_s30  ;;  %s9154_s30 = scalar_lea.vmem [#allocation4], %s7672_s24 }
  0x1e   : > { %346 = vst.msk [vmem:[#allocation2] sm:$0xff] %vm345_vm1, %v297_v4  ;;  %347 = vst.msk [vmem:[#allocation2 + $0x8] sm:$0xff] %vm345_vm1, %v298_v5  ;;  %v299_v7 = vld [vmem:[%s7938_s21 + $0x10] sm:$0xff]  ;;  %v301_v8 = vld [vmem:[%s7938_s21 + $0x20] sm:$0xff]  ;;  %s5620_s6 = sshll.u32 %s9154_s30, 4  ;;  %s9267_s9 = scalar_lea.hbm %s9325_s4, %s7675_s5  ;;  %s9269_s6 = int_to_ptr.vmem [resolvable:$true] %s5620_s6 }
  0x1f   : > { %349 = vst.msk [vmem:[#allocation2 + $0x18] sm:$0xff] %vm345_vm1, %v300_v6  ;;  %v302_v9 = vld [vmem:[%s7938_s21 + $0x28] sm:$0xff]  ;;  %348 = vst.msk [vmem:[#allocation2 + $0x10] sm:$0xff] %vm345_vm1, %v299_v7  ;;  %v303_v10 = vld [vmem:[%s7938_s21 + $0x30] sm:$0xff]  ;;  %s7736_s10 = scalar_lea.vmem %s9269_s6, 6144  ;;  %s7740_s12 = sshll.u32 %s7817_s11, 4  ;;  %s7741_s12 = int_to_ptr.vmem [resolvable:$false] %s7740_s12 }
  0x20   : > { %350 = vst.msk [vmem:[#allocation2 + $0x20] sm:$0xff] %vm345_vm1, %v301_v8  ;;  %351 = vst.msk [vmem:[#allocation2 + $0x28] sm:$0xff] %vm345_vm1, %v302_v9  ;;  %v304_v11 = vld [vmem:[%s7938_s21 + $0x38] sm:$0xff]  ;;  %v305_v12 = vld [vmem:[%s7938_s21 + $0x40] sm:$0xff]  ;;  %p7737_p12 = scmp.ne.s32.totalorder %s9269_s6, %s7736_s10  ;;  %s7742_s13 = scalar_lea.vmem %s7741_s12, 12288 }
  0x21   : > { %352 = vst.msk [vmem:[#allocation2 + $0x30] sm:$0xff] %vm345_vm1, %v303_v10  ;;  %353 = vst.msk [vmem:[#allocation2 + $0x38] sm:$0xff] %vm345_vm1, %v304_v11  ;;  %v306_v13 = vld [vmem:[%s7938_s21 + $0x48] sm:$0xff]  ;;  %v307_v14 = vld [vmem:[%s7938_s21 + $0x50] sm:$0xff]  ;;  %p7743_p1 = scmp.lt.s32.totalorder %s9269_s6, %s7741_s12  ;;  %p7744_p2 = scmp.lt.s32.totalorder %s7742_s13, %s7736_s10 }
  0x22   : > { %354 = vst.msk [vmem:[#allocation2 + $0x40] sm:$0xff] %vm345_vm1, %v305_v12  ;;  %v308_v15 = vld [vmem:[%s7938_s21 + $0x58] sm:$0xff]  ;;  %355 = vst.msk [vmem:[#allocation2 + $0x48] sm:$0xff] %vm345_vm1, %v306_v13  ;;  %v309_v16 = vld [vmem:[%s7938_s21 + $0x60] sm:$0xff]  ;;  %p7738_p13 = pnand %p7737_p12, %p7885_p4 }
  0x23   : > { %356 = vst.msk [vmem:[#allocation2 + $0x50] sm:$0xff] %vm345_vm1, %v307_v14  ;;  %357 = vst.msk [vmem:[#allocation2 + $0x58] sm:$0xff] %vm345_vm1, %v308_v15  ;;  %v310_v17 = vld [vmem:[%s7938_s21 + $0x68] sm:$0xff]  ;;  %v311_v18 = vld [vmem:[%s7938_s21 + $0x70] sm:$0xff]  ;;  %p7745_p3 = por %p7744_p2, %p7743_p1 }
  0x24   : > { %358 = vst.msk [vmem:[#allocation2 + $0x60] sm:$0xff] %vm345_vm1, %v309_v16  ;;  %359 = vst.msk [vmem:[#allocation2 + $0x68] sm:$0xff] %vm345_vm1, %v310_v17  ;;  %v312_v19 = vld [vmem:[%s7938_s21 + $0x78] sm:$0xff]  ;;  %v313_v20 = vld [vmem:[%s7938_s21 + $0x80] sm:$0xff]  ;;  %p7739_p0 = pneg %p7738_p13 }
  0x25   : > { %360 = vst.msk [vmem:[#allocation2 + $0x70] sm:$0xff] %vm345_vm1, %v311_v18  ;;  %v314_v21 = vld [vmem:[%s7938_s21 + $0x88] sm:$0xff]  ;;  %361 = vst.msk [vmem:[#allocation2 + $0x78] sm:$0xff] %vm345_vm1, %v312_v19  ;;  %v315_v22 = vld [vmem:[%s7938_s21 + $0x90] sm:$0xff] }
  0x26   : > { %362 = vst.msk [vmem:[#allocation2 + $0x80] sm:$0xff] %vm345_vm1, %v313_v20  ;;  %363 = vst.msk [vmem:[#allocation2 + $0x88] sm:$0xff] %vm345_vm1, %v314_v21  ;;  %v316_v23 = vld [vmem:[%s7938_s21 + $0x98] sm:$0xff]  ;;  %v317_v24 = vld [vmem:[%s7938_s21 + $0xa0] sm:$0xff]  ;;  %p7746_p5 = pnand %p7745_p3, %p7739_p0 }
  0x27   : > { %364 = vst.msk [vmem:[#allocation2 + $0x90] sm:$0xff] %vm345_vm1, %v315_v22  ;;  %365 = vst.msk [vmem:[#allocation2 + $0x98] sm:$0xff] %vm345_vm1, %v316_v23  ;;  %v318_v25 = vld [vmem:[%s7938_s21 + $0xa8] sm:$0xff]  ;;  %v319_v26 = vld [vmem:[%s7938_s21 + $0xb0] sm:$0xff] }
  0x28   : > { %366 = vst.msk [vmem:[#allocation2 + $0xa0] sm:$0xff] %vm345_vm1, %v317_v24  ;;  %v320_v27 = vld [vmem:[%s7938_s21 + $0xb8] sm:$0xff]  ;;  %v456_v28 = vld [vmem:[#allocation2 + $0x1] sm:$0xff]  ;;  %367 = vst.msk [vmem:[#allocation2 + $0xa8] sm:$0xff] %vm345_vm1, %v318_v25 }
  0x29   : > { %v7985_v29 = vld [vmem:[#allocation2 + $0x18] sm:$0xff]  ;;  %368 = vst.msk [vmem:[#allocation2 + $0xb0] sm:$0xff] %vm345_vm1, %v319_v26  ;;  %369 = vst.msk [vmem:[#allocation2 + $0xb8] sm:$0xff] %vm345_vm1, %v320_v27  ;;  %v321_v30 = vld [vmem:[%s7938_s21 + $0xc0] sm:$0xff]  ;;  %6622 = vmatprep.mubr.msk.f32.mxu1 %vm345_vm1, %v456_v28 }
  0x2a   : > { %6918 = vmatprep.mubr.msk.f32.mxu0 %vm345_vm1, %v7985_v29  ;;  %v457_v31 = vld [vmem:[#allocation2 + $0x9] sm:$0xff]  ;;  %v7994_v32 = vld [vmem:[#allocation2 + $0x20] sm:$0xff]  ;;  %v458_v33 = vld [vmem:[#allocation2 + $0x11] sm:$0xff]  ;;  %370 = vst.msk [vmem:[#allocation2 + $0xc0] sm:$0xff] %vm345_vm1, %v321_v30 }
  0x2b   : > { %6623 = vmatmul.mubr.msk.f32.vlgmr.msra.gmra.mrb[0].mxu1 %vm345_vm1, %v457_v31  ;;  %6919 = vmatmul.mubr.msk.f32.vlgmr.msra.gmra.mrb[0].mxu0 %vm345_vm1, %v7994_v32  ;;  %v8000_v34 = vld [vmem:[#allocation2 + $0x28] sm:$0xff]  ;;  %v459_v37 = vld [vmem:[#allocation2 + $0x19] sm:$0xff]  ;;  %v8016_v38 = vld [vmem:[#allocation2 + $0x30] sm:$0xff] }
  0x2c   : > { %6695 = vmatpush3.msk.msra.mxu1 %vm650_vm0, %v7915_v2  ;;  %6991 = vmatpush3.msk.msra.mxu0 %vm650_vm0, %v7920_v3  ;;  %v460_v39 = vld [vmem:[#allocation2 + $0x21] sm:$0xff]  ;;  %v8021_v40 = vld [vmem:[#allocation2 + $0x38] sm:$0xff]  ;;  %v461_v41 = vld [vmem:[#allocation2 + $0x29] sm:$0xff] }
  0x2d   : > { %6625 = vmatprep.mubr.msk.f32.mxu1 %vm345_vm1, %v458_v33  ;;  %6921 = vmatprep.mubr.msk.f32.mxu0 %vm345_vm1, %v8000_v34  ;;  %v8033_v42 = vld [vmem:[#allocation2 + $0x40] sm:$0xff]  ;;  %v8035_v43 = vld [vmem:[#allocation2 + $0x31] sm:$0xff]  ;;  %v8037_v44 = vld [vmem:[#allocation2 + $0x48] sm:$0xff] }
  0x2e   : > { %7064 = vmatprep.subr.msk.mxu0 %vm650_vm0, %v8005_v35  ;;  %6768 = vmatprep.subr.msk.mxu1 %vm650_vm0, %v8010_v36  ;;  %v8046_v45 = vld [vmem:[#allocation2 + $0x39] sm:$0xff]  ;;  %v8048_v46 = vld [vmem:[#allocation2 + $0x50] sm:$0xff]  ;;  %v8050_v47 = vld [vmem:[#allocation2 + $0x41] sm:$0xff] }
  0x2f   : > { %6626 = vmatmul.mubr.msk.f32.gmra.mrb[2].mxu1 %vm345_vm1, %v459_v37  ;;  %6922 = vmatmul.mubr.msk.f32.gmra.mrb[2].mxu0 %vm345_vm1, %v8016_v38  ;;  %v8052_v48 = vld [vmem:[#allocation2 + $0x58] sm:$0xff]  ;;  %v8062_v49 = vld [vmem:[#allocation2 + $0x49] sm:$0xff]  ;;  %v8064_v50 = vld [vmem:[#allocation2 + $0x60] sm:$0xff] }
  0x30   : > { %6628 = vmatprep.mubr.msk.f32.mxu1 %vm345_vm1, %v460_v39  ;;  %6924 = vmatprep.mubr.msk.f32.mxu0 %vm345_vm1, %v8021_v40  ;;  %v322_v51 = vld [vmem:[%s7938_s21 + $0xc8] sm:$0xff]  ;;  %v8067_v52 = vld [vmem:[#allocation2 + $0x51] sm:$0xff]  ;;  %v325_v56 = vld [vmem:[%s7938_s21 + $0xe0] sm:$0xff] }
  0x31   : > { %v8069_v53 = vld [vmem:[#allocation2 + $0x68] sm:$0xff]  ;;  %371 = vst.msk [vmem:[#allocation2 + $0xc8] sm:$0xff] %vm345_vm1, %v322_v51  ;;  %v323_v54 = vld [vmem:[%s7938_s21 + $0xd0] sm:$0xff]  ;;  %v324_v55 = vld [vmem:[%s7938_s21 + $0xd8] sm:$0xff] }
  0x32   : > { %372 = vst.msk [vmem:[#allocation2 + $0xd0] sm:$0xff] %vm345_vm1, %v323_v54  ;;  %v8080_v57 = vld [vmem:[#allocation2 + $0x59] sm:$0xff]  ;;  %373 = vst.msk [vmem:[#allocation2 + $0xd8] sm:$0xff] %vm345_vm1, %v324_v55  ;;  %v326_v58 = vld [vmem:[%s7938_s21 + $0xe8] sm:$0xff] }
  0x33   : > { %6629 = vmatmul.mubr.msk.f32.gmra.mrb[4].mxu1 %vm345_vm1, %v461_v41  ;;  %6925 = vmatmul.mubr.msk.f32.gmra.mrb[4].mxu0 %vm345_vm1, %v8033_v42  ;;  %374 = vst.msk [vmem:[#allocation2 + $0xe0] sm:$0xff] %vm345_vm1, %v325_v56  ;;  %v8089_v59 = vld [vmem:[#allocation2 + $0x70] sm:$0xff]  ;;  %375 = vst.msk [vmem:[#allocation2 + $0xe8] sm:$0xff] %vm345_vm1, %v326_v58  ;;  %v328_v61 = vld [vmem:[%s7938_s21 + $0xf8] sm:$0xff] }
  0x34   : > { %6631 = vmatprep.mubr.msk.f32.mxu1 %vm345_vm1, %v8035_v43  ;;  %6927 = vmatprep.mubr.msk.f32.mxu0 %vm345_vm1, %v8037_v44  ;;  %v327_v60 = vld [vmem:[%s7938_s21 + $0xf0] sm:$0xff]  ;;  %v8094_v62 = vld [vmem:[#allocation2 + $0x61] sm:$0xff]  ;;  %v8096_v63 = vld [vmem:[#allocation2 + $0x78] sm:$0xff]  ;;  %377 = vst.msk [vmem:[#allocation2 + $0xf8] sm:$0xff] %vm345_vm1, %v328_v61 }
  0x35   : > { %376 = vst.msk [vmem:[#allocation2 + $0xf0] sm:$0xff] %vm345_vm1, %v327_v60  ;;  %v329_v0 = vld [vmem:[%s7938_s21 + $0x100] sm:$0xff]  ;;  %v330_v2 = vld [vmem:[%s7938_s21 + $0x108] sm:$0xff]  ;;  %v331_v3 = vld [vmem:[%s7938_s21 + $0x110] sm:$0xff] }
  0x36   : > { %378 = vst.msk [vmem:[#allocation2 + $0x100] sm:$0xff] %vm345_vm1, %v329_v0  ;;  %379 = vst.msk [vmem:[#allocation2 + $0x108] sm:$0xff] %vm345_vm1, %v330_v2  ;;  %v332_v4 = vld [vmem:[%s7938_s21 + $0x118] sm:$0xff]  ;;  %v8115_v5 = vld [vmem:[#allocation2 + $0x69] sm:$0xff] }
  0x37   : > { %6632 = vmatmul.mubr.msk.f32.gmra.mrb[6].mxu1 %vm345_vm1, %v8046_v45  ;;  %6928 = vmatmul.mubr.msk.f32.gmra.mrb[6].mxu0 %vm345_vm1, %v8048_v46  ;;  %380 = vst.msk [vmem:[#allocation2 + $0x110] sm:$0xff] %vm345_vm1, %v331_v3  ;;  %v8117_v6 = vld [vmem:[#allocation2 + $0x80] sm:$0xff]  ;;  %381 = vst.msk [vmem:[#allocation2 + $0x118] sm:$0xff] %vm345_vm1, %v332_v4  ;;  %v8121_v8 = vld [vmem:[#allocation2 + $0x71] sm:$0xff] }
  0x38   : > { %6634 = vmatprep.mubr.msk.f32.mxu1 %vm345_vm1, %v8050_v47  ;;  %6930 = vmatprep.mubr.msk.f32.mxu0 %vm345_vm1, %v8052_v48  ;;  %v333_v7 = vld [vmem:[%s7938_s21 + $0x120] sm:$0xff]  ;;  %v8123_v9 = vld [vmem:[#allocation2 + $0x88] sm:$0xff]  ;;  %v335_v11 = vld [vmem:[%s7938_s21 + $0x130] sm:$0xff] }
  0x39   : > { %382 = vst.msk [vmem:[#allocation2 + $0x120] sm:$0xff] %vm345_vm1, %v333_v7  ;;  %v334_v10 = vld [vmem:[%s7938_s21 + $0x128] sm:$0xff]  ;;  %v8137_v12 = vld [vmem:[#allocation2 + $0x79] sm:$0xff]  ;;  %v8139_v13 = vld [vmem:[#allocation2 + $0x90] sm:$0xff] }
  0x3a   : > { %383 = vst.msk [vmem:[#allocation2 + $0x128] sm:$0xff] %vm345_vm1, %v334_v10  ;;  %384 = vst.msk [vmem:[#allocation2 + $0x130] sm:$0xff] %vm345_vm1, %v335_v11  ;;  %v8142_v14 = vld [vmem:[#allocation2 + $0x81] sm:$0xff]  ;;  %v8144_v15 = vld [vmem:[#allocation2 + $0x98] sm:$0xff] }
  0x3b   : > { %6635 = vmatmul.mubr.msk.f32.gmra.mrb[8].mxu1 %vm345_vm1, %v8062_v49  ;;  %6931 = vmatmul.mubr.msk.f32.gmra.mrb[8].mxu0 %vm345_vm1, %v8064_v50  ;;  %v336_v16 = vld [vmem:[%s7938_s21 + $0x138] sm:$0xff]  ;;  %v337_v17 = vld [vmem:[%s7938_s21 + $0x140] sm:$0xff]  ;;  %v338_v18 = vld [vmem:[%s7938_s21 + $0x148] sm:$0xff] }
  0x3c   : > { %6637 = vmatprep.mubr.msk.f32.mxu1 %vm345_vm1, %v8067_v52  ;;  %6933 = vmatprep.mubr.msk.f32.mxu0 %vm345_vm1, %v8069_v53  ;;  %385 = vst.msk [vmem:[#allocation2 + $0x138] sm:$0xff] %vm345_vm1, %v336_v16  ;;  %386 = vst.msk [vmem:[#allocation2 + $0x140] sm:$0xff] %vm345_vm1, %v337_v17  ;;  %v8161_v19 = vld [vmem:[#allocation2 + $0x89] sm:$0xff]  ;;  %v8163_v20 = vld [vmem:[#allocation2 + $0xa0] sm:$0xff] }
  0x3d   : > { %387 = vst.msk [vmem:[#allocation2 + $0x148] sm:$0xff] %vm345_vm1, %v338_v18  ;;  %v339_v21 = vld [vmem:[%s7938_s21 + $0x150] sm:$0xff]  ;;  %v8169_v23 = vld [vmem:[#allocation2 + $0xa8] sm:$0xff]  ;;  %v340_v24 = vld [vmem:[%s7938_s21 + $0x158] sm:$0xff] }
  0x3e   : > { %v8167_v22 = vld [vmem:[#allocation2 + $0x91] sm:$0xff]  ;;  %388 = vst.msk [vmem:[#allocation2 + $0x150] sm:$0xff] %vm345_vm1, %v339_v21  ;;  %389 = vst.msk [vmem:[#allocation2 + $0x158] sm:$0xff] %vm345_vm1, %v340_v24  ;;  %v341_v25 = vld [vmem:[%s7938_s21 + $0x160] sm:$0xff] }
  0x3f   : > { %6638 = vmatmul.mubr.msk.f32.gmra.mrb[10].mxu1 %vm345_vm1, %v8080_v57  ;;  %6934 = vmatmul.mubr.msk.f32.gmra.mrb[10].mxu0 %vm345_vm1, %v8089_v59  ;;  %v8184_v26 = vld [vmem:[#allocation2 + $0x99] sm:$0xff]  ;;  %390 = vst.msk [vmem:[#allocation2 + $0x160] sm:$0xff] %vm345_vm1, %v341_v25  ;;  %v342_v27 = vld [vmem:[%s7938_s21 + $0x168] sm:$0xff]  ;;  %v8192_v28 = vld [vmem:[#allocation2 + $0xb0] sm:$0xff] }
  0x40   : > { %6640 = vmatprep.mubr.msk.f32.mxu1 %vm345_vm1, %v8094_v62  ;;  %6936 = vmatprep.mubr.msk.f32.mxu0 %vm345_vm1, %v8096_v63  ;;  %391 = vst.msk [vmem:[#allocation2 + $0x168] sm:$0xff] %vm345_vm1, %v342_v27  ;;  %v343_v30 = vld [vmem:[%s7938_s21 + $0x170] sm:$0xff]  ;;  %v344_v31 = vld [vmem:[%s7938_s21 + $0x178] sm:$0xff]  ;;  %v8197_v33 = vld [vmem:[#allocation2 + $0xa1] sm:$0xff] }
  0x41   : > { %v8199_v37 = vld [vmem:[#allocation2 + $0xb8] sm:$0xff]  ;;  %392 = vst.msk [vmem:[#allocation2 + $0x170] sm:$0xff] %vm345_vm1, %v343_v30  ;;  %393 = vst.msk [vmem:[#allocation2 + $0x178] sm:$0xff] %vm345_vm1, %v344_v31  ;;  %v394_v39 = vld [vmem:[%s8178_s7] sm:$0xff] }
  0x42   : > { %400 = vst.msk [vmem:[#allocation2 + $0x180] sm:$0xff] %vm345_vm1, %v394_v39  ;;  %v8213_v41 = vld [vmem:[#allocation2 + $0xa9] sm:$0xff]  ;;  %v8215_v51 = vld [vmem:[#allocation2 + $0xc0] sm:$0xff]  ;;  %v8217_v54 = vld [vmem:[#allocation2 + $0xb1] sm:$0xff] }
  0x43   : > { %6641 = vmatmul.mubr.msk.f32.gmra.mrb[12].mxu1 %vm345_vm1, %v8115_v5  ;;  %6937 = vmatmul.mubr.msk.f32.gmra.mrb[12].mxu0 %vm345_vm1, %v8117_v6  ;;  %v8219_v55 = vld [vmem:[#allocation2 + $0xc8] sm:$0xff]  ;;  %v8229_v56 = vld [vmem:[#allocation2 + $0xb9] sm:$0xff]  ;;  %v8231_v58 = vld [vmem:[#allocation2 + $0xd0] sm:$0xff] }
  0x44   : > { %6643 = vmatprep.mubr.msk.f32.mxu1 %vm345_vm1, %v8121_v8  ;;  %6939 = vmatprep.mubr.msk.f32.mxu0 %vm345_vm1, %v8123_v9  ;;  %v8233_v60 = vld [vmem:[#allocation2 + $0xc1] sm:$0xff]  ;;  %v8245_v0 = vld [vmem:[#allocation2 + $0xc9] sm:$0xff]  ;;  %v8249_v3 = vld [vmem:[#allocation2 + $0xd1] sm:$0xff] }
  0x45   : > { %v8235_v61 = vld [vmem:[#allocation2 + $0x1a] sm:$0xff]  ;;  %v8247_v2 = vld [vmem:[#allocation2 + $0x22] sm:$0xff]  ;;  %v396_v7 = vld [vmem:[%s8178_s7 + $0x10] sm:$0xff] }
  0x46   : > { %9366 = vst [vmem:[#allocation7_spill] sm:$0xff] %v8247_v2  ;;  %v395_v4 = vld [vmem:[%s8178_s7 + $0x8] sm:$0xff]  ;;  %402 = vst.msk [vmem:[#allocation2 + $0x190] sm:$0xff] %vm345_vm1, %v396_v7  ;;  %v397_v11 = vld [vmem:[%s8178_s7 + $0x18] sm:$0xff] }
  0x47   : > { %6644 = vmatmul.mubr.msk.f32.gmra.mrb[14].mxu1 %vm345_vm1, %v8137_v12  ;;  %6940 = vmatmul.mubr.msk.f32.gmra.mrb[14].mxu0 %vm345_vm1, %v8139_v13  ;;  %v8253_v10 = vld [vmem:[#allocation2 + $0x2a] sm:$0xff]  ;;  %401 = vst.msk [vmem:[#allocation2 + $0x188] sm:$0xff] %vm345_vm1, %v395_v4  ;;  %v8261_v16 = vld [vmem:[%s9323_s2 + $0x18] sm:$0xf]  ;;  %403 = vst.msk [vmem:[#allocation2 + $0x198] sm:$0xff] %vm345_vm1, %v397_v11 }
  0x48   : > { %6646 = vmatprep.mubr.msk.f32.mxu1 %vm345_vm1, %v8142_v14  ;;  %6942 = vmatprep.mubr.msk.f32.mxu0 %vm345_vm1, %v8144_v15  ;;  %9367 = vst [vmem:[#allocation8_spill] sm:$0xff] %v8253_v10  ;;  %v8272_v17 = vld [vmem:[#allocation2 + $0xd9] sm:$0xff]  ;;  %v8278_v21 = vld [vmem:[#allocation2 + $0xe1] sm:$0xff]  ;;  %v8296_v27 = vld [vmem:[#allocation2 + $0xf1] sm:$0xff] }
  0x49   : > { %v8274_v18 = vld [vmem:[#allocation2 + $0x32] sm:$0xff]  ;;  %v8280_v24 = vld [vmem:[#allocation2 + $0x3a] sm:$0xff]  ;;  %v8294_v25 = vld [vmem:[#allocation2 + $0x42] sm:$0xff] }
  0x4a   : > { %9368 = vst [vmem:[#allocation9_spill] sm:$0xff] %v8274_v18  ;;  %9369 = vst [vmem:[#allocation10_spill] sm:$0xff] %v8280_v24  ;;  %v8298_v30 = vld [vmem:[#allocation2 + $0x4a] sm:$0xff]  ;;  %v8308_v31 = vld [vmem:[#allocation2 + $0xf9] sm:$0xff] }
  0x4b   : > { %6647 = vmatmul.mubr.msk.f32.gmra.mrb[16].mxu1 %vm345_vm1, %v8161_v19  ;;  %6943 = vmatmul.mubr.msk.f32.gmra.mrb[16].mxu0 %vm345_vm1, %v8163_v20  ;;  %9370 = vst [vmem:[#allocation11_spill] sm:$0xff] %v8294_v25  ;;  %9371 = vst [vmem:[#allocation12_spill] sm:$0xff] %v8298_v30  ;;  %v8310_v39 = vld [vmem:[#allocation2 + $0x52] sm:$0xff]  ;;  %v8312_v4 = vld [vmem:[#allocation2 + $0x101] sm:$0xff] }
  0x4c   : > { %6649 = vmatprep.mubr.msk.f32.mxu1 %vm345_vm1, %v8167_v22  ;;  %6945 = vmatprep.mubr.msk.f32.mxu0 %vm345_vm1, %v8169_v23  ;;  %9372 = vst [vmem:[#allocation13_spill] sm:$0xff] %v8310_v39  ;;  %v8314_v7 = vld [vmem:[#allocation2 + $0x5a] sm:$0xff]  ;;  %v8324_v11 = vld [vmem:[#allocation2 + $0x109] sm:$0xff] }
  0x4d   : > { %9373 = vst [vmem:[#allocation14_spill] sm:$0xff] %v8314_v7  ;;  %9374 = vst [vmem:[#allocation15_spill] sm:$0xff] %v8324_v11 }
  0x4f   : > { %6650 = vmatmul.mubr.msk.f32.gmra.mrb[18].mxu1 %vm345_vm1, %v8184_v26  ;;  %6946 = vmatmul.mubr.msk.f32.gmra.mrb[18].mxu0 %vm345_vm1, %v8192_v28 }
  0x50   : > { %6652 = vmatprep.mubr.msk.f32.mxu1 %vm345_vm1, %v8197_v33  ;;  %6948 = vmatprep.mubr.msk.f32.mxu0 %vm345_vm1, %v8199_v37 }
  0x53   : > { %6653 = vmatmul.mubr.msk.f32.gmra.mrb[20].mxu1 %vm345_vm1, %v8213_v41  ;;  %6949 = vmatmul.mubr.msk.f32.gmra.mrb[20].mxu0 %vm345_vm1, %v8215_v51 }
  0x54   : > { %6655 = vmatprep.mubr.msk.f32.mxu1 %vm345_vm1, %v8217_v54  ;;  %6951 = vmatprep.mubr.msk.f32.mxu0 %vm345_vm1, %v8219_v55 }
  0x57   : > { %6656 = vmatmul.mubr.msk.f32.gmra.mrb[22].mxu1 %vm345_vm1, %v8229_v56  ;;  %6952 = vmatmul.mubr.msk.f32.gmra.mrb[22].mxu0 %vm345_vm1, %v8231_v58 }
  0x58   : > { %6658 = vmatprep.mubr.msk.f32.mxu1 %vm345_vm1, %v8233_v60  ;;  %6992 = vmatprep.mubr.msk.f32.mxu0 %vm345_vm1, %v8235_v61 }
  0x5b   : > { %6659 = vmatmul.mubr.msk.f32.gmra.mrb[24].mxu1 %vm345_vm1, %v8245_v0  ;;  %6993 = vmatmul.mubr.msk.f32.vlgmr.msra.gmra.mrb[0].mxu0 %vm345_vm1, %v8247_v2  ;;  %v8362_v2 = vld [vmem:[#allocation2 + $0x8a] sm:$0xff] }
  0x5c   : > { %7065 = vmatpush3.msk.msra.mxu0 %vm650_vm0, %v8005_v35  ;;  %6661 = vmatprep.mubr.msk.f32.mxu1 %vm345_vm1, %v8249_v3  ;;  %v8292_v35 = vld [vmem:[#allocation2 + $0xe9] sm:$0xff]  ;;  %9385 = vst [vmem:[#allocation26_spill] sm:$0xff] %v8362_v2 }
  0x5d   : > { %6995 = vmatprep.mubr.msk.f32.mxu0 %vm345_vm1, %v8253_v10  ;;  %7138 = vmatprep.subr.msk.mxu0 %vm650_vm0, %v8261_v16  ;;  %v8346_v10 = vld [vmem:[#allocation2 + $0x7a] sm:$0xff] }
  0x5e   : > { %9381 = vst [vmem:[#allocation22_spill] sm:$0xff] %v8346_v10 }
  0x5f   : > { %6662 = vmatmul.mubr.msk.f32.gmra.mrb[26].mxu1 %vm345_vm1, %v8272_v17  ;;  %6996 = vmatmul.mubr.msk.f32.gmra.mrb[2].mxu0 %vm345_vm1, %v8274_v18  ;;  %v8344_v18 = vld [vmem:[#allocation2 + $0x121] sm:$0xff] }
  0x60   : > { %6664 = vmatprep.mubr.msk.f32.mxu1 %vm345_vm1, %v8278_v21  ;;  %6998 = vmatprep.mubr.msk.f32.mxu0 %vm345_vm1, %v8280_v24  ;;  %v8330_v24 = vld [vmem:[#allocation2 + $0x6a] sm:$0xff]  ;;  %9380 = vst [vmem:[#allocation21_spill] sm:$0xff] %v8344_v18 }
  0x61   : > { %9377 = vst [vmem:[#allocation18_spill] sm:$0xff] %v8330_v24 }
  0x63   : > { %6665 = vmatmul.mubr.msk.f32.gmra.mrb[28].mxu1 %vm345_vm1, %v8292_v35  ;;  %6999 = vmatmul.mubr.msk.f32.gmra.mrb[4].mxu0 %vm345_vm1, %v8294_v25  ;;  %v8328_v25 = vld [vmem:[#allocation2 + $0x111] sm:$0xff] }
  0x64   : > { %6667 = vmatprep.mubr.msk.f32.mxu1 %vm345_vm1, %v8296_v27  ;;  %7001 = vmatprep.mubr.msk.f32.mxu0 %vm345_vm1, %v8298_v30  ;;  %v8326_v30 = vld [vmem:[#allocation2 + $0x62] sm:$0xff]  ;;  %9376 = vst [vmem:[#allocation17_spill] sm:$0xff] %v8328_v25 }
  0x65   : > { %9375 = vst [vmem:[#allocation16_spill] sm:$0xff] %v8326_v30 }
  0x67   : > { %6668 = vmatmul.mubr.msk.f32.gmra.mrb[30].mxu1 %vm345_vm1, %v8308_v31  ;;  %7002 = vmatmul.mubr.msk.f32.gmra.mrb[6].mxu0 %vm345_vm1, %v8310_v39  ;;  %v8342_v39 = vld [vmem:[#allocation2 + $0x72] sm:$0xff] }
  0x68   : > { %6670 = vmatprep.mubr.msk.f32.mxu1 %vm345_vm1, %v8312_v4  ;;  %7004 = vmatprep.mubr.msk.f32.mxu0 %vm345_vm1, %v8314_v7  ;;  %v8340_v7 = vld [vmem:[#allocation2 + $0x119] sm:$0xff]  ;;  %9379 = vst [vmem:[#allocation20_spill] sm:$0xff] %v8342_v39 }
  0x69   : > { %9378 = vst [vmem:[#allocation19_spill] sm:$0xff] %v8340_v7 }
  0x6b   : > { %6671 = vmatmul.mubr.msk.f32.gmra.mrb[32].mxu1 %vm345_vm1, %v8324_v11  ;;  %7005 = vmatmul.mubr.msk.f32.gmra.mrb[8].mxu0 %vm345_vm1, %v8326_v30  ;;  %v8358_v30 = vld [vmem:[#allocation2 + $0x82] sm:$0xff]  ;;  %v8456_v11 = vld [vmem:[%s9323_s2 + $0x10] sm:$0xf] }
  0x6c   : > { %6673 = vmatprep.mubr.msk.f32.mxu1 %vm345_vm1, %v8328_v25  ;;  %7007 = vmatprep.mubr.msk.f32.mxu0 %vm345_vm1, %v8330_v24  ;;  %v8356_v24 = vld [vmem:[#allocation2 + $0x129] sm:$0xff]  ;;  %9383 = vst [vmem:[#allocation24_spill] sm:$0xff] %v8358_v30  ;;  %v8360_v25 = vld [vmem:[#allocation2 + $0x131] sm:$0xff] }
  0x6d   : > { %9382 = vst [vmem:[#allocation23_spill] sm:$0xff] %v8356_v24  ;;  %9384 = vst [vmem:[#allocation25_spill] sm:$0xff] %v8360_v25 }
  0x6f   : > { %6674 = vmatmul.mubr.msk.f32.gmra.mrb[34].mxu1 %vm345_vm1, %v8340_v7  ;;  %7008 = vmatmul.mubr.msk.f32.gmra.mrb[10].mxu0 %vm345_vm1, %v8342_v39  ;;  %v8374_v39 = vld [vmem:[#allocation2 + $0x92] sm:$0xff]  ;;  %v8378_v7 = vld [vmem:[#allocation2 + $0x9a] sm:$0xff] }
  0x70   : > { %6676 = vmatprep.mubr.msk.f32.mxu1 %vm345_vm1, %v8344_v18  ;;  %7010 = vmatprep.mubr.msk.f32.mxu0 %vm345_vm1, %v8346_v10  ;;  %v8372_v10 = vld [vmem:[#allocation2 + $0x139] sm:$0xff]  ;;  %9387 = vst [vmem:[#allocation28_spill] sm:$0xff] %v8374_v39  ;;  %v8376_v18 = vld [vmem:[#allocation2 + $0x141] sm:$0xff]  ;;  %9389 = vst [vmem:[#allocation30_spill] sm:$0xff] %v8378_v7 }
  0x71   : > { %9386 = vst [vmem:[#allocation27_spill] sm:$0xff] %v8372_v10  ;;  %9388 = vst [vmem:[#allocation29_spill] sm:$0xff] %v8376_v18 }
  0x73   : > { %6677 = vmatmul.mubr.msk.f32.gmra.mrb[36].mxu1 %vm345_vm1, %v8356_v24  ;;  %7011 = vmatmul.mubr.msk.f32.gmra.mrb[12].mxu0 %vm345_vm1, %v8358_v30  ;;  %v8390_v30 = vld [vmem:[#allocation2 + $0xa2] sm:$0xff]  ;;  %v8394_v24 = vld [vmem:[#allocation2 + $0xaa] sm:$0xff] }
  0x74   : > { %6679 = vmatprep.mubr.msk.f32.mxu1 %vm345_vm1, %v8360_v25  ;;  %7013 = vmatprep.mubr.msk.f32.mxu0 %vm345_vm1, %v8362_v2  ;;  %v8388_v2 = vld [vmem:[#allocation2 + $0x149] sm:$0xff]  ;;  %9391 = vst [vmem:[#allocation32_spill] sm:$0xff] %v8390_v30  ;;  %v8392_v25 = vld [vmem:[#allocation2 + $0x151] sm:$0xff]  ;;  %9393 = vst [vmem:[#allocation34_spill] sm:$0xff] %v8394_v24 }
  0x75   : > { %9390 = vst [vmem:[#allocation31_spill] sm:$0xff] %v8388_v2  ;;  %9392 = vst [vmem:[#allocation33_spill] sm:$0xff] %v8392_v25 }
  0x77   : > { %6680 = vmatmul.mubr.msk.f32.gmra.mrb[38].mxu1 %vm345_vm1, %v8372_v10  ;;  %7014 = vmatmul.mubr.msk.f32.gmra.mrb[14].mxu0 %vm345_vm1, %v8374_v39  ;;  %v8406_v39 = vld [vmem:[#allocation2 + $0xb2] sm:$0xff]  ;;  %v8410_v10 = vld [vmem:[#allocation2 + $0xba] sm:$0xff] }
  0x78   : > { %6682 = vmatprep.mubr.msk.f32.mxu1 %vm345_vm1, %v8376_v18  ;;  %7016 = vmatprep.mubr.msk.f32.mxu0 %vm345_vm1, %v8378_v7  ;;  %v8404_v7 = vld [vmem:[#allocation2 + $0x159] sm:$0xff]  ;;  %9395 = vst [vmem:[#allocation36_spill] sm:$0xff] %v8406_v39  ;;  %v8408_v18 = vld [vmem:[#allocation2 + $0x161] sm:$0xff]  ;;  %9397 = vst [vmem:[#allocation38_spill] sm:$0xff] %v8410_v10 }
  0x79   : > { %9394 = vst [vmem:[#allocation35_spill] sm:$0xff] %v8404_v7  ;;  %9396 = vst [vmem:[#allocation37_spill] sm:$0xff] %v8408_v18 }
  0x7b   : > { %6683 = vmatmul.mubr.msk.f32.gmra.mrb[40].mxu1 %vm345_vm1, %v8388_v2  ;;  %7017 = vmatmul.mubr.msk.f32.gmra.mrb[16].mxu0 %vm345_vm1, %v8390_v30  ;;  %v8422_v30 = vld [vmem:[#allocation2 + $0xc2] sm:$0xff]  ;;  %v8426_v2 = vld [vmem:[#allocation2 + $0xca] sm:$0xff] }
  0x7c   : > { %6685 = vmatprep.mubr.msk.f32.mxu1 %vm345_vm1, %v8392_v25  ;;  %7019 = vmatprep.mubr.msk.f32.mxu0 %vm345_vm1, %v8394_v24  ;;  %v8420_v24 = vld [vmem:[#allocation2 + $0x169] sm:$0xff]  ;;  %9399 = vst [vmem:[#allocation40_spill] sm:$0xff] %v8422_v30  ;;  %v8424_v25 = vld [vmem:[#allocation2 + $0x171] sm:$0xff]  ;;  %9401 = vst [vmem:[#allocation42_spill] sm:$0xff] %v8426_v2 }
  0x7d   : > { %9398 = vst [vmem:[#allocation39_spill] sm:$0xff] %v8420_v24  ;;  %9400 = vst [vmem:[#allocation41_spill] sm:$0xff] %v8424_v25 }
  0x7f   : > { %6686 = vmatmul.mubr.msk.f32.gmra.mrb[42].mxu1 %vm345_vm1, %v8404_v7  ;;  %7020 = vmatmul.mubr.msk.f32.gmra.mrb[18].mxu0 %vm345_vm1, %v8406_v39  ;;  %v8438_v39 = vld [vmem:[#allocation2 + $0xd2] sm:$0xff]  ;;  %v8440_v7 = vld [vmem:[#allocation2 + $0xda] sm:$0xff] }
  0x80   : > { %6688 = vmatprep.mubr.msk.f32.mxu1 %vm345_vm1, %v8408_v18  ;;  %7022 = vmatprep.mubr.msk.f32.mxu0 %vm345_vm1, %v8410_v10  ;;  %v8436_v10 = vld [vmem:[#allocation2 + $0x179] sm:$0xff]  ;;  %9403 = vst [vmem:[#allocation44_spill] sm:$0xff] %v8440_v7 }
  0x81   : > { %9402 = vst [vmem:[#allocation43_spill] sm:$0xff] %v8436_v10  ;;  %v407_v18 = vld [vmem:[#allocation2] sm:$0xff] }
  0x83   : > { %6689 = vmatmul.mubr.msk.f32.gmra.mrb[44].mxu1 %vm345_vm1, %v8420_v24  ;;  %7023 = vmatmul.mubr.msk.f32.gmra.mrb[20].mxu0 %vm345_vm1, %v8422_v30  ;;  %v8449_v30 = vld [vmem:[#allocation2 + $0xe2] sm:$0xff]  ;;  %v8451_v24 = vld [vmem:[#allocation2 + $0xea] sm:$0xff] }
  0x84   : > { %6691 = vmatprep.mubr.msk.f32.mxu1 %vm345_vm1, %v8424_v25  ;;  %7025 = vmatprep.mubr.msk.f32.mxu0 %vm345_vm1, %v8426_v2  ;;  %v408_v2 = vld [vmem:[#allocation2 + $0x8] sm:$0xff]  ;;  %v409_v25 = vld [vmem:[#allocation2 + $0x10] sm:$0xff] }
  0x87   : > { %6692 = vmatmul.mubr.msk.f32.gmra.mrb[46].mxu1 %vm345_vm1, %v8436_v10  ;;  %7026 = vmatmul.mubr.msk.f32.gmra.mrb[22].mxu0 %vm345_vm1, %v8438_v39  ;;  %v398_v10 = vld [vmem:[%s8178_s7 + $0x20] sm:$0xff] }
  0x88   : > { %6696 = vmatprep.mubr.msk.f32.mxu1 %vm345_vm1, %v407_v18  ;;  %7028 = vmatprep.mubr.msk.f32.mxu0 %vm345_vm1, %v8440_v7  ;;  %404 = vst.msk [vmem:[#allocation2 + $0x1a0] sm:$0xff] %vm345_vm1, %v398_v10  ;;  %v8466_v18 = vld [vmem:[#allocation2 + $0xf2] sm:$0xff]  ;;  %v8470_v7 = vld [vmem:[#allocation2 + $0xfa] sm:$0xff]  ;;  %v8485_v10 = vld [vmem:[#allocation2 + $0x102] sm:$0xff] }
  0x8b   : > { %6697 = vmatmul.mubr.msk.f32.vlgmr.msra.gmra.mrb[0].mxu1 %vm345_vm1, %v408_v2  ;;  %7029 = vmatmul.mubr.msk.f32.gmra.mrb[24].mxu0 %vm345_vm1, %v8449_v30  ;;  %v399_v2 = vld [vmem:[%s8178_s7 + $0x28] sm:$0xff] }
  0x8c   : > { %6769 = vmatpush3.msk.msra.mxu1 %vm650_vm0, %v8010_v36  ;;  %6699 = vmatprep.mubr.msk.f32.mxu1 %vm345_vm1, %v409_v25  ;;  %405 = vst.msk [vmem:[#allocation2 + $0x1a8] sm:$0xff] %vm345_vm1, %v399_v2  ;;  %v7816_v36 = vmov 0.0   ;;  %v8487_v25 = vld [vmem:[#allocation2 + $0x10a] sm:$0xff] }
  0x8d   : > { %7031 = vmatprep.mubr.msk.f32.mxu0 %vm345_vm1, %v8451_v24  ;;  %6842 = vmatprep.subr.msk.mxu1 %vm650_vm0, %v8456_v11  ;;  %406 = vst.msk [vmem:[#allocation2 + $0x1b0] sm:$0xff] %vm345_vm1, %v7816_v36  ;;  %v9417_v2 = vld [vmem:[#allocation13_spill] sm:$0xff] }
  0x8e   : > { %v9418_v36 = vld [vmem:[#allocation29_spill] sm:$0xff] }
  0x8f   : > { %6700 = vmatmul.mubr.msk.f32.gmra.mrb[2].mxu1 %vm345_vm1, %v7985_v29  ;;  %7032 = vmatmul.mubr.msk.f32.gmra.mrb[26].mxu0 %vm345_vm1, %v8466_v18  ;;  %v8497_v29 = vld [vmem:[#allocation2 + $0x112] sm:$0xff] }
  0x90   : > { %6702 = vmatprep.mubr.msk.f32.mxu1 %vm345_vm1, %v7994_v32  ;;  %7034 = vmatprep.mubr.msk.f32.mxu0 %vm345_vm1, %v8470_v7  ;;  %v8499_v32 = vld [vmem:[#allocation2 + $0x11a] sm:$0xff] }
  0x93   : > { %6703 = vmatmul.mubr.msk.f32.gmra.mrb[4].mxu1 %vm345_vm1, %v8000_v34  ;;  %7035 = vmatmul.mubr.msk.f32.gmra.mrb[28].mxu0 %vm345_vm1, %v8485_v10  ;;  %v8509_v34 = vld [vmem:[#allocation2 + $0x122] sm:$0xff] }
  0x94   : > { %6705 = vmatprep.mubr.msk.f32.mxu1 %vm345_vm1, %v8016_v38  ;;  %7037 = vmatprep.mubr.msk.f32.mxu0 %vm345_vm1, %v8487_v25  ;;  %v8511_v38 = vld [vmem:[#allocation2 + $0x12a] sm:$0xff] }
  0x97   : > { %6706 = vmatmul.mubr.msk.f32.gmra.mrb[6].mxu1 %vm345_vm1, %v8021_v40  ;;  %7038 = vmatmul.mubr.msk.f32.gmra.mrb[30].mxu0 %vm345_vm1, %v8497_v29  ;;  %v8521_v40 = vld [vmem:[#allocation2 + $0x132] sm:$0xff] }
  0x98   : > { %6708 = vmatprep.mubr.msk.f32.mxu1 %vm345_vm1, %v8033_v42  ;;  %7040 = vmatprep.mubr.msk.f32.mxu0 %vm345_vm1, %v8499_v32  ;;  %v8523_v42 = vld [vmem:[#allocation2 + $0x13a] sm:$0xff] }
  0x9b   : > { %6709 = vmatmul.mubr.msk.f32.gmra.mrb[8].mxu1 %vm345_vm1, %v8037_v44  ;;  %7041 = vmatmul.mubr.msk.f32.gmra.mrb[32].mxu0 %vm345_vm1, %v8509_v34  ;;  %v8533_v44 = vld [vmem:[#allocation2 + $0x142] sm:$0xff] }
  0x9c   : > { %6711 = vmatprep.mubr.msk.f32.mxu1 %vm345_vm1, %v8048_v46  ;;  %7043 = vmatprep.mubr.msk.f32.mxu0 %vm345_vm1, %v8511_v38  ;;  %v8535_v46 = vld [vmem:[#allocation2 + $0x14a] sm:$0xff] }
  0x9f   : > { %6712 = vmatmul.mubr.msk.f32.gmra.mrb[10].mxu1 %vm345_vm1, %v8052_v48  ;;  %7044 = vmatmul.mubr.msk.f32.gmra.mrb[34].mxu0 %vm345_vm1, %v8521_v40  ;;  %v8545_v48 = vld [vmem:[#allocation2 + $0x152] sm:$0xff] }
  0xa0   : > { %6714 = vmatprep.mubr.msk.f32.mxu1 %vm345_vm1, %v8064_v50  ;;  %7046 = vmatprep.mubr.msk.f32.mxu0 %vm345_vm1, %v8523_v42  ;;  %v8547_v50 = vld [vmem:[#allocation2 + $0x15a] sm:$0xff] }
  0xa3   : > { %6715 = vmatmul.mubr.msk.f32.gmra.mrb[12].mxu1 %vm345_vm1, %v8069_v53  ;;  %7047 = vmatmul.mubr.msk.f32.gmra.mrb[36].mxu0 %vm345_vm1, %v8533_v44  ;;  %v8557_v53 = vld [vmem:[#allocation2 + $0x162] sm:$0xff] }
  0xa4   : > { %6717 = vmatprep.mubr.msk.f32.mxu1 %vm345_vm1, %v8089_v59  ;;  %7049 = vmatprep.mubr.msk.f32.mxu0 %vm345_vm1, %v8535_v46  ;;  %v8559_v59 = vld [vmem:[#allocation2 + $0x16a] sm:$0xff] }
  0xa7   : > { %6718 = vmatmul.mubr.msk.f32.gmra.mrb[14].mxu1 %vm345_vm1, %v8096_v63  ;;  %7050 = vmatmul.mubr.msk.f32.gmra.mrb[38].mxu0 %vm345_vm1, %v8545_v48  ;;  %v8569_v63 = vld [vmem:[#allocation2 + $0x172] sm:$0xff] }
  0xa8   : > { %6720 = vmatprep.mubr.msk.f32.mxu1 %vm345_vm1, %v8117_v6  ;;  %7052 = vmatprep.mubr.msk.f32.mxu0 %vm345_vm1, %v8547_v50  ;;  %v8571_v6 = vld [vmem:[#allocation2 + $0x17a] sm:$0xff] }
  0xab   : > { %6721 = vmatmul.mubr.msk.f32.gmra.mrb[16].mxu1 %vm345_vm1, %v8123_v9  ;;  %7053 = vmatmul.mubr.msk.f32.gmra.mrb[40].mxu0 %vm345_vm1, %v8557_v53  ;;  %v3058_v9 = vld [vmem:[#allocation2 + $0x182] sm:$0xff] }
  0xac   : > { %6723 = vmatprep.mubr.msk.f32.mxu1 %vm345_vm1, %v8139_v13  ;;  %7055 = vmatprep.mubr.msk.f32.mxu0 %vm345_vm1, %v8559_v59  ;;  %v3059_v13 = vld [vmem:[#allocation2 + $0x18a] sm:$0xff] }
  0xaf   : > { %6724 = vmatmul.mubr.msk.f32.gmra.mrb[18].mxu1 %vm345_vm1, %v8144_v15  ;;  %7056 = vmatmul.mubr.msk.f32.gmra.mrb[42].mxu0 %vm345_vm1, %v8569_v63  ;;  %v3060_v15 = vld [vmem:[#allocation2 + $0x192] sm:$0xff] }
  0xb0   : > { %6726 = vmatprep.mubr.msk.f32.mxu1 %vm345_vm1, %v8163_v20  ;;  %7058 = vmatprep.mubr.msk.f32.mxu0 %vm345_vm1, %v8571_v6  ;;  %v8597_v20 = vld [vmem:[%s9323_s2 + $0x20] sm:$0xf] }
  0xb3   : > { %6727 = vmatmul.mubr.msk.f32.gmra.mrb[20].mxu1 %vm345_vm1, %v8169_v23  ;;  %7059 = vmatmul.mubr.msk.f32.gmra.mrb[44].mxu0 %vm345_vm1, %v3058_v9  ;;  %v8607_v23 = vld [vmem:[#allocation2 + $0xd8] sm:$0xff]  ;;  %v9419_v9 = vld [vmem:[#allocation14_spill] sm:$0xff] }
  0xb4   : > { %6729 = vmatprep.mubr.msk.f32.mxu1 %vm345_vm1, %v8192_v28  ;;  %7061 = vmatprep.mubr.msk.f32.mxu0 %vm345_vm1, %v3059_v13  ;;  %v8637_v28 = vld [vmem:[#allocation2 + $0x100] sm:$0xff]  ;;  %v9420_v13 = vld [vmem:[#allocation31_spill] sm:$0xff] }
  0xb7   : > { %6730 = vmatmul.mubr.msk.f32.gmra.mrb[22].mxu1 %vm345_vm1, %v8199_v37  ;;  %7062 = vmatmul.mubr.msk.f32.gmra.mrb[46].mxu0 %vm345_vm1, %v3060_v15  ;;  %v8709_v37 = vld [vmem:[#allocation2 + $0x160] sm:$0xff] }
  0xb8   : > { %6732 = vmatprep.mubr.msk.f32.mxu1 %vm345_vm1, %v8215_v51  ;;  %7066 = vmatprep.mubr.msk.f32.mxu0 %vm345_vm1, %v8035_v43  ;;  %v8611_v43 = vld [vmem:[#allocation2 + $0xe0] sm:$0xff]  ;;  %v8721_v51 = vld [vmem:[#allocation2 + $0x170] sm:$0xff] }
  0xb9   : > { %v9421_v15 = vld [vmem:[#allocation16_spill] sm:$0xff] }
  0xbb   : > { %6733 = vmatmul.mubr.msk.f32.gmra.mrb[24].mxu1 %vm345_vm1, %v8219_v55  ;;  %7067 = vmatmul.mubr.msk.f32.vlgmr.msra.gmra.mrb[0].mxu0 %vm345_vm1, %v8046_v45  ;;  %v8623_v45 = vld [vmem:[#allocation2 + $0xe8] sm:$0xff] }
  0xbc   : > { %7139 = vmatpush3.msk.msra.mxu0 %vm650_vm0, %v8261_v16  ;;  %6735 = vmatprep.mubr.msk.f32.mxu1 %vm345_vm1, %v8231_v58  ;;  %v1411_v55 = vld [vmem:[#allocation2 + $0x2] sm:$0xff]  ;;  %v1413_v58 = vld [vmem:[#allocation2 + $0x12] sm:$0xff] }
  0xbd   : > { %7069 = vmatprep.mubr.msk.f32.mxu0 %vm345_vm1, %v8050_v47  ;;  %7212 = vmatprep.subr.msk.mxu0 %vm650_vm0, %v8597_v20  ;;  %v8625_v47 = vld [vmem:[#allocation2 + $0xf0] sm:$0xff]  ;;  %v9407_v16 = vld [vmem:[#allocation8_spill] sm:$0xff] }
  0xbf   : > { %6736 = vmatmul.mubr.msk.f32.gmra.mrb[26].mxu1 %vm345_vm1, %v8607_v23  ;;  %7070 = vmatmul.mubr.msk.f32.gmra.mrb[2].mxu0 %vm345_vm1, %v8062_v49  ;;  %v8635_v49 = vld [vmem:[#allocation2 + $0xf8] sm:$0xff] }
  0xc0   : > { %6738 = vmatprep.mubr.msk.f32.mxu1 %vm345_vm1, %v8611_v43  ;;  %7072 = vmatprep.mubr.msk.f32.mxu0 %vm345_vm1, %v8067_v52  ;;  %v8647_v52 = vld [vmem:[#allocation2 + $0x108] sm:$0xff] }
  0xc3   : > { %6739 = vmatmul.mubr.msk.f32.gmra.mrb[28].mxu1 %vm345_vm1, %v8623_v45  ;;  %7073 = vmatmul.mubr.msk.f32.gmra.mrb[4].mxu0 %vm345_vm1, %v8080_v57  ;;  %v8649_v57 = vld [vmem:[#allocation2 + $0x110] sm:$0xff] }
  0xc4   : > { %6741 = vmatprep.mubr.msk.f32.mxu1 %vm345_vm1, %v8625_v47  ;;  %7075 = vmatprep.mubr.msk.f32.mxu0 %vm345_vm1, %v8094_v62  ;;  %v8659_v62 = vld [vmem:[#allocation2 + $0x118] sm:$0xff] }
  0xc7   : > { %6742 = vmatmul.mubr.msk.f32.gmra.mrb[30].mxu1 %vm345_vm1, %v8635_v49  ;;  %7076 = vmatmul.mubr.msk.f32.gmra.mrb[6].mxu0 %vm345_vm1, %v8115_v5  ;;  %v8661_v5 = vld [vmem:[#allocation2 + $0x120] sm:$0xff] }
  0xc8   : > { %6744 = vmatprep.mubr.msk.f32.mxu1 %vm345_vm1, %v8637_v28  ;;  %7078 = vmatprep.mubr.msk.f32.mxu0 %vm345_vm1, %v8121_v8  ;;  %v8671_v8 = vld [vmem:[#allocation2 + $0x128] sm:$0xff] }
  0xcb   : > { %6745 = vmatmul.mubr.msk.f32.gmra.mrb[32].mxu1 %vm345_vm1, %v8647_v52  ;;  %7079 = vmatmul.mubr.msk.f32.gmra.mrb[8].mxu0 %vm345_vm1, %v8137_v12  ;;  %v8673_v12 = vld [vmem:[#allocation2 + $0x130] sm:$0xff] }
  0xcc   : > { %6747 = vmatprep.mubr.msk.f32.mxu1 %vm345_vm1, %v8649_v57  ;;  %7081 = vmatprep.mubr.msk.f32.mxu0 %vm345_vm1, %v8142_v14  ;;  %v8683_v14 = vld [vmem:[#allocation2 + $0x138] sm:$0xff] }
  0xcf   : > { %6748 = vmatmul.mubr.msk.f32.gmra.mrb[34].mxu1 %vm345_vm1, %v8659_v62  ;;  %7082 = vmatmul.mubr.msk.f32.gmra.mrb[10].mxu0 %vm345_vm1, %v8161_v19  ;;  %v8685_v19 = vld [vmem:[#allocation2 + $0x140] sm:$0xff] }
  0xd0   : > { %6750 = vmatprep.mubr.msk.f32.mxu1 %vm345_vm1, %v8661_v5  ;;  %7084 = vmatprep.mubr.msk.f32.mxu0 %vm345_vm1, %v8167_v22  ;;  %v8695_v22 = vld [vmem:[#allocation2 + $0x148] sm:$0xff] }
  0xd3   : > { %6751 = vmatmul.mubr.msk.f32.gmra.mrb[36].mxu1 %vm345_vm1, %v8671_v8  ;;  %7085 = vmatmul.mubr.msk.f32.gmra.mrb[12].mxu0 %vm345_vm1, %v8184_v26  ;;  %v8697_v26 = vld [vmem:[#allocation2 + $0x150] sm:$0xff] }
  0xd4   : > { %6753 = vmatprep.mubr.msk.f32.mxu1 %vm345_vm1, %v8673_v12  ;;  %7087 = vmatprep.mubr.msk.f32.mxu0 %vm345_vm1, %v8197_v33  ;;  %v8707_v33 = vld [vmem:[#allocation2 + $0x158] sm:$0xff] }
  0xd7   : > { %6754 = vmatmul.mubr.msk.f32.gmra.mrb[38].mxu1 %vm345_vm1, %v8683_v14  ;;  %7088 = vmatmul.mubr.msk.f32.gmra.mrb[14].mxu0 %vm345_vm1, %v8213_v41  ;;  %v8719_v41 = vld [vmem:[#allocation2 + $0x168] sm:$0xff] }
  0xd8   : > { %6756 = vmatprep.mubr.msk.f32.mxu1 %vm345_vm1, %v8685_v19  ;;  %7090 = vmatprep.mubr.msk.f32.mxu0 %vm345_vm1, %v8217_v54  ;;  %v8731_v54 = vld [vmem:[#allocation2 + $0x178] sm:$0xff] }
  0xdb   : > { %6757 = vmatmul.mubr.msk.f32.gmra.mrb[40].mxu1 %vm345_vm1, %v8695_v22  ;;  %7091 = vmatmul.mubr.msk.f32.gmra.mrb[16].mxu0 %vm345_vm1, %v8229_v56  ;;  %v1412_v56 = vld [vmem:[#allocation2 + $0xa] sm:$0xff] }
  0xdc   : > { %6759 = vmatprep.mubr.msk.f32.mxu1 %vm345_vm1, %v8697_v26  ;;  %7093 = vmatprep.mubr.msk.f32.mxu0 %vm345_vm1, %v8233_v60  ;;  %v9404_v60 = vld [vmem:[#allocation15_spill] sm:$0xff] }
  0xdf   : > { %6760 = vmatmul.mubr.msk.f32.gmra.mrb[42].mxu1 %vm345_vm1, %v8707_v33  ;;  %7094 = vmatmul.mubr.msk.f32.gmra.mrb[18].mxu0 %vm345_vm1, %v8245_v0  ;;  %v9405_v0 = vld [vmem:[#allocation7_spill] sm:$0xff] }
  0xe0   : > { %6762 = vmatprep.mubr.msk.f32.mxu1 %vm345_vm1, %v8709_v37  ;;  %7096 = vmatprep.mubr.msk.f32.mxu0 %vm345_vm1, %v8249_v3  ;;  %v9406_v3 = vld [vmem:[#allocation17_spill] sm:$0xff] }
  0xe3   : > { %6763 = vmatmul.mubr.msk.f32.gmra.mrb[44].mxu1 %vm345_vm1, %v8719_v41  ;;  %7097 = vmatmul.mubr.msk.f32.gmra.mrb[20].mxu0 %vm345_vm1, %v8272_v17  ;;  %v9408_v17 = vld [vmem:[#allocation19_spill] sm:$0xff] }
  0xe4   : > { %6765 = vmatprep.mubr.msk.f32.mxu1 %vm345_vm1, %v8721_v51  ;;  %7099 = vmatprep.mubr.msk.f32.mxu0 %vm345_vm1, %v8278_v21  ;;  %v9409_v21 = vld [vmem:[#allocation9_spill] sm:$0xff] }
  0xe7   : > { %6766 = vmatmul.mubr.msk.f32.gmra.mrb[46].mxu1 %vm345_vm1, %v8731_v54  ;;  %7100 = vmatmul.mubr.msk.f32.gmra.mrb[22].mxu0 %vm345_vm1, %v8292_v35  ;;  %v9412_v35 = vld [vmem:[#allocation23_spill] sm:$0xff] }
  0xe8   : > { %6770 = vmatprep.mubr.msk.f32.mxu1 %vm345_vm1, %v1411_v55  ;;  %7102 = vmatprep.mubr.msk.f32.mxu0 %vm345_vm1, %v8296_v27  ;;  %v9413_v27 = vld [vmem:[#allocation11_spill] sm:$0xff]  ;;  %v9422_v55 = vld [vmem:[#allocation33_spill] sm:$0xff] }
  0xeb   : > { %6771 = vmatmul.mubr.msk.f32.vlgmr.msra.gmra.mrb[0].mxu1 %vm345_vm1, %v1412_v56  ;;  %7103 = vmatmul.mubr.msk.f32.gmra.mrb[24].mxu0 %vm345_vm1, %v8308_v31  ;;  %v9414_v31 = vld [vmem:[#allocation25_spill] sm:$0xff]  ;;  %v9423_v56 = vld [vmem:[#allocation18_spill] sm:$0xff] }
  0xec   : > { %6843 = vmatpush3.msk.msra.mxu1 %vm650_vm0, %v8456_v11  ;;  %6773 = vmatprep.mubr.msk.f32.mxu1 %vm345_vm1, %v1413_v58  ;;  %v9416_v11 = vld [vmem:[#allocation27_spill] sm:$0xff] }
  0xed   : > { %7105 = vmatprep.mubr.msk.f32.mxu0 %vm345_vm1, %v8312_v4  ;;  %7286 = vmatprep.subr.msk.mxu1 %vm650_vm0, %v7906_v1  ;;  %v9410_v1 = vld [vmem:[#allocation21_spill] sm:$0xff]  ;;  %v9415_v4 = vld [vmem:[#allocation12_spill] sm:$0xff]  ;;  %v9424_v58 = vld [vmem:[#allocation35_spill] sm:$0xff] }
  0xef   : > { %6774 = vmatmul.mubr.msk.f32.gmra.mrb[2].mxu1 %vm345_vm1, %v8235_v61  ;;  %7106 = vmatmul.mubr.msk.f32.gmra.mrb[26].mxu0 %vm345_vm1, %v9404_v60  ;;  %v9411_v61 = vld [vmem:[#allocation10_spill] sm:$0xff]  ;;  %v9425_v60 = vld [vmem:[#allocation20_spill] sm:$0xff] }
  0xf0   : > { %6776 = vmatprep.mubr.msk.f32.mxu1 %vm345_vm1, %v9405_v0  ;;  %7108 = vmatprep.mubr.msk.f32.mxu0 %vm345_vm1, %v9406_v3  ;;  %v9426_v0 = vld [vmem:[#allocation37_spill] sm:$0xff]  ;;  %v9427_v3 = vld [vmem:[#allocation22_spill] sm:$0xff] }
  0xf3   : > { %6777 = vmatmul.mubr.msk.f32.gmra.mrb[4].mxu1 %vm345_vm1, %v9407_v16  ;;  %7109 = vmatmul.mubr.msk.f32.gmra.mrb[28].mxu0 %vm345_vm1, %v9408_v17  ;;  %v9428_v16 = vld [vmem:[#allocation39_spill] sm:$0xff]  ;;  %v9429_v17 = vld [vmem:[#allocation24_spill] sm:$0xff] }
  0xf4   : > { %6779 = vmatprep.mubr.msk.f32.mxu1 %vm345_vm1, %v9409_v21  ;;  %7111 = vmatprep.mubr.msk.f32.mxu0 %vm345_vm1, %v9410_v1  ;;  %v9430_v21 = vld [vmem:[#allocation41_spill] sm:$0xff] }
  0xf5   : > { %v8806_v1 = vld [vmem:[#allocation2 + $0x181] sm:$0xff] }
  0xf7   : > { %6780 = vmatmul.mubr.msk.f32.gmra.mrb[6].mxu1 %vm345_vm1, %v9411_v61  ;;  %7112 = vmatmul.mubr.msk.f32.gmra.mrb[30].mxu0 %vm345_vm1, %v9412_v35  ;;  %v9431_v61 = vld [vmem:[#allocation26_spill] sm:$0xff]  ;;  %v9432_v35 = vld [vmem:[#allocation43_spill] sm:$0xff] }
  0xf8   : > { %6782 = vmatprep.mubr.msk.f32.mxu1 %vm345_vm1, %v9413_v27  ;;  %7114 = vmatprep.mubr.msk.f32.mxu0 %vm345_vm1, %v9414_v31  ;;  %v9433_v27 = vld [vmem:[#allocation28_spill] sm:$0xff]  ;;  %v8816_v31 = vld [vmem:[#allocation2 + $0x189] sm:$0xff] }
  0xfb   : > { %6783 = vmatmul.mubr.msk.f32.gmra.mrb[8].mxu1 %vm345_vm1, %v9415_v4  ;;  %7115 = vmatmul.mubr.msk.f32.gmra.mrb[32].mxu0 %vm345_vm1, %v9416_v11  ;;  %v8818_v4 = vld [vmem:[#allocation2 + $0x191] sm:$0xff] }
  0xfc   : > { %6785 = vmatprep.mubr.msk.f32.mxu1 %vm345_vm1, %v9417_v2  ;;  %7117 = vmatprep.mubr.msk.f32.mxu0 %vm345_vm1, %v9418_v36  ;;  %v9434_v11 = vld [vmem:[#allocation30_spill] sm:$0xff]  ;;  %v9435_v2 = vld [vmem:[#allocation32_spill] sm:$0xff] }
  0xfd   : > { %v3802_v36 = vld [vmem:[#allocation2 + $0x199] sm:$0xff] }
  0xff   : > { %6786 = vmatmul.mubr.msk.f32.gmra.mrb[10].mxu1 %vm345_vm1, %v9419_v9  ;;  %7118 = vmatmul.mubr.msk.f32.gmra.mrb[34].mxu0 %vm345_vm1, %v9420_v13  ;;  %v3803_v9 = vld [vmem:[#allocation2 + $0x1a1] sm:$0xff]  ;;  %v9436_v13 = vld [vmem:[#allocation34_spill] sm:$0xff] }
 0x100   : > { %6788 = vmatprep.mubr.msk.f32.mxu1 %vm345_vm1, %v9421_v15  ;;  %7120 = vmatprep.mubr.msk.f32.mxu0 %vm345_vm1, %v9422_v55  ;;  %v9437_v15 = vld [vmem:[#allocation36_spill] sm:$0xff]  ;;  %v3804_v55 = vld [vmem:[#allocation2 + $0x1a9] sm:$0xff] }
 0x103   : > { %6789 = vmatmul.mubr.msk.f32.gmra.mrb[12].mxu1 %vm345_vm1, %v9423_v56  ;;  %7121 = vmatmul.mubr.msk.f32.gmra.mrb[36].mxu0 %vm345_vm1, %v9424_v58  ;;  %v3707_v56 = vld [vmem:[#allocation2 + $0x30] sm:$0xff] }
 0x104   : > { %6791 = vmatprep.mubr.msk.f32.mxu1 %vm345_vm1, %v9425_v60  ;;  %7123 = vmatprep.mubr.msk.f32.mxu0 %vm345_vm1, %v9426_v0  ;;  %v9438_v58 = vld [vmem:[#allocation38_spill] sm:$0xff]  ;;  %v9439_v60 = vld [vmem:[#allocation40_spill] sm:$0xff]  ;;  %v3708_v0 = vld [vmem:[#allocation2 + $0x38] sm:$0xff] }
 0x107   : > { %6792 = vmatmul.mubr.msk.f32.gmra.mrb[14].mxu1 %vm345_vm1, %v9427_v3  ;;  %7124 = vmatmul.mubr.msk.f32.gmra.mrb[38].mxu0 %vm345_vm1, %v9428_v16  ;;  %v3709_v3 = vld [vmem:[#allocation2 + $0x40] sm:$0xff]  ;;  %v9440_v16 = vld [vmem:[#allocation42_spill] sm:$0xff] }
 0x108   : > { %6794 = vmatprep.mubr.msk.f32.mxu1 %vm345_vm1, %v9429_v17  ;;  %7126 = vmatprep.mubr.msk.f32.mxu0 %vm345_vm1, %v9430_v21  ;;  %v3710_v17 = vld [vmem:[#allocation2 + $0x48] sm:$0xff]  ;;  %v3711_v21 = vld [vmem:[#allocation2 + $0x50] sm:$0xff] }
 0x10b   : > { %6795 = vmatmul.mubr.msk.f32.gmra.mrb[16].mxu1 %vm345_vm1, %v9431_v61  ;;  %7127 = vmatmul.mubr.msk.f32.gmra.mrb[40].mxu0 %vm345_vm1, %v9432_v35  ;;  %v9441_v61 = vld [vmem:[#allocation44_spill] sm:$0xff]  ;;  %v3712_v35 = vld [vmem:[#allocation2 + $0x58] sm:$0xff] }
 0x10c   : > { %6797 = vmatprep.mubr.msk.f32.mxu1 %vm345_vm1, %v9433_v27  ;;  %7129 = vmatprep.mubr.msk.f32.mxu0 %vm345_vm1, %v8806_v1  ;;  %v3713_v27 = vld [vmem:[#allocation2 + $0x60] sm:$0xff] }
 0x10f   : > { %6798 = vmatmul.mubr.msk.f32.gmra.mrb[18].mxu1 %vm345_vm1, %v9434_v11  ;;  %7130 = vmatmul.mubr.msk.f32.gmra.mrb[42].mxu0 %vm345_vm1, %v8816_v31  ;;  %v2066_v11 = vld [vmem:[#allocation2 + $0x51] sm:$0xff] }
 0x110   : > { %6800 = vmatprep.mubr.msk.f32.mxu1 %vm345_vm1, %v9435_v2  ;;  %7132 = vmatprep.mubr.msk.f32.mxu0 %vm345_vm1, %v8818_v4  ;;  %v2067_v2 = vld [vmem:[#allocation2 + $0x59] sm:$0xff] }
 0x113   : > { %6801 = vmatmul.mubr.msk.f32.gmra.mrb[20].mxu1 %vm345_vm1, %v9436_v13  ;;  %7133 = vmatmul.mubr.msk.f32.gmra.mrb[44].mxu0 %vm345_vm1, %v3802_v36  ;;  %v2068_v36 = vld [vmem:[#allocation2 + $0x61] sm:$0xff]  ;;  %v2070_v13 = vld [vmem:[#allocation2 + $0x71] sm:$0xff] }
 0x114   : > { %6803 = vmatprep.mubr.msk.f32.mxu1 %vm345_vm1, %v9437_v15  ;;  %7135 = vmatprep.mubr.msk.f32.mxu0 %vm345_vm1, %v3803_v9  ;;  %v2069_v9 = vld [vmem:[#allocation2 + $0x69] sm:$0xff]  ;;  %v2071_v15 = vld [vmem:[#allocation2 + $0x79] sm:$0xff] }
 0x117   : > { %6804 = vmatmul.mubr.msk.f32.gmra.mrb[22].mxu1 %vm345_vm1, %v9438_v58  ;;  %7136 = vmatmul.mubr.msk.f32.gmra.mrb[46].mxu0 %vm345_vm1, %v3804_v55  ;;  %v2072_v55 = vld [vmem:[#allocation2 + $0x81] sm:$0xff]  ;;  %v2074_v58 = vld [vmem:[#allocation2 + $0x91] sm:$0xff] }
 0x118   : > { %6806 = vmatprep.mubr.msk.f32.mxu1 %vm345_vm1, %v9439_v60  ;;  %7140 = vmatprep.mubr.msk.f32.mxu0 %vm345_vm1, %v3707_v56  ;;  %v2073_v56 = vld [vmem:[#allocation2 + $0x89] sm:$0xff]  ;;  %v2075_v60 = vld [vmem:[#allocation2 + $0x99] sm:$0xff] }
 0x11b   : > { %6807 = vmatmul.mubr.msk.f32.gmra.mrb[24].mxu1 %vm345_vm1, %v9440_v16  ;;  %7141 = vmatmul.mubr.msk.f32.vlgmr.msra.gmra.mrb[0].mxu0 %vm345_vm1, %v3708_v0  ;;  %v2076_v0 = vld [vmem:[#allocation2 + $0xa1] sm:$0xff] }
 0x11c   : > { %7213 = vmatpush3.msk.msra.mxu0 %vm650_vm0, %v8597_v20  ;;  %6809 = vmatprep.mubr.msk.f32.mxu1 %vm345_vm1, %v8438_v39  ;;  %v3714_v39 = vld [vmem:[#allocation2 + $0x68] sm:$0xff]  ;;  %v3715_v20 = vld [vmem:[#allocation2 + $0x70] sm:$0xff]  ;;  %v8969_v16 = vld [vmem:[#allocation2 + $0x180] sm:$0xff] }
 0x11d   : > { %7143 = vmatprep.mubr.msk.f32.mxu0 %vm345_vm1, %v3709_v3  ;;  %v2077_v3 = vld [vmem:[#allocation2 + $0xa9] sm:$0xff] }
 0x11f   : > { %6810 = vmatmul.mubr.msk.f32.gmra.mrb[26].mxu1 %vm345_vm1, %v9441_v61  ;;  %7144 = vmatmul.mubr.msk.f32.gmra.mrb[2].mxu0 %vm345_vm1, %v3710_v17  ;;  %v2078_v17 = vld [vmem:[#allocation2 + $0xb1] sm:$0xff]  ;;  %v2079_v61 = vld [vmem:[#allocation2 + $0xb9] sm:$0xff] }
 0x120   : > { %6812 = vmatprep.mubr.msk.f32.mxu1 %vm345_vm1, %v8449_v30  ;;  %7146 = vmatprep.mubr.msk.f32.mxu0 %vm345_vm1, %v3711_v21  ;;  %v3717_v30 = vld [vmem:[#allocation2 + $0x80] sm:$0xff]  ;;  %v8977_v21 = vld [vmem:[#allocation2 + $0x188] sm:$0xff] }
 0x123   : > { %6813 = vmatmul.mubr.msk.f32.gmra.mrb[28].mxu1 %vm345_vm1, %v8451_v24  ;;  %7147 = vmatmul.mubr.msk.f32.gmra.mrb[4].mxu0 %vm345_vm1, %v3712_v35  ;;  %v3716_v24 = vld [vmem:[#allocation2 + $0x78] sm:$0xff]  ;;  %v8979_v35 = vld [vmem:[#allocation2 + $0x190] sm:$0xff] }
 0x124   : > { %6815 = vmatprep.mubr.msk.f32.mxu1 %vm345_vm1, %v8466_v18  ;;  %7149 = vmatprep.mubr.msk.f32.mxu0 %vm345_vm1, %v3713_v27  ;;  %v3719_v18 = vld [vmem:[#allocation2 + $0x90] sm:$0xff]  ;;  %v2080_v27 = vld [vmem:[#allocation2 + $0xc1] sm:$0xff] }
 0x127   : > { %6816 = vmatmul.mubr.msk.f32.gmra.mrb[30].mxu1 %vm345_vm1, %v8470_v7  ;;  %7150 = vmatmul.mubr.msk.f32.gmra.mrb[6].mxu0 %vm345_vm1, %v3714_v39  ;;  %v3718_v7 = vld [vmem:[#allocation2 + $0x88] sm:$0xff]  ;;  %v3752_v39 = vld [vmem:[#allocation2 + $0x198] sm:$0xff] }
 0x128   : > { %6818 = vmatprep.mubr.msk.f32.mxu1 %vm345_vm1, %v8485_v10  ;;  %7152 = vmatprep.mubr.msk.f32.mxu0 %vm345_vm1, %v3715_v20  ;;  %v3720_v10 = vld [vmem:[#allocation2 + $0x98] sm:$0xff]  ;;  %v2081_v20 = vld [vmem:[#allocation2 + $0xc9] sm:$0xff] }
 0x12b   : > { %6819 = vmatmul.mubr.msk.f32.gmra.mrb[32].mxu1 %vm345_vm1, %v8487_v25  ;;  %7153 = vmatmul.mubr.msk.f32.gmra.mrb[8].mxu0 %vm345_vm1, %v3716_v24  ;;  %v3721_v25 = vld [vmem:[#allocation2 + $0xa0] sm:$0xff] }
 0x12c   : > { %6821 = vmatprep.mubr.msk.f32.mxu1 %vm345_vm1, %v8497_v29  ;;  %7155 = vmatprep.mubr.msk.f32.mxu0 %vm345_vm1, %v3717_v30  ;;  %v3722_v29 = vld [vmem:[#allocation2 + $0xa8] sm:$0xff]  ;;  %v3753_v24 = vld [vmem:[#allocation2 + $0x1a0] sm:$0xff]  ;;  %v2082_v30 = vld [vmem:[#allocation2 + $0xd1] sm:$0xff] }
 0x12f   : > { %6822 = vmatmul.mubr.msk.f32.gmra.mrb[34].mxu1 %vm345_vm1, %v8499_v32  ;;  %7156 = vmatmul.mubr.msk.f32.gmra.mrb[10].mxu0 %vm345_vm1, %v3718_v7  ;;  %v3723_v32 = vld [vmem:[#allocation2 + $0xb0] sm:$0xff]  ;;  %v3754_v7 = vld [vmem:[#allocation2 + $0x1a8] sm:$0xff] }
 0x130   : > { %6824 = vmatprep.mubr.msk.f32.mxu1 %vm345_vm1, %v8509_v34  ;;  %7158 = vmatprep.mubr.msk.f32.mxu0 %vm345_vm1, %v3719_v18  ;;  %v3724_v34 = vld [vmem:[#allocation2 + $0xb8] sm:$0xff] }
 0x131   : > { %v2083_v18 = vld [vmem:[#allocation2 + $0xd9] sm:$0xff] }
 0x133   : > { %6825 = vmatmul.mubr.msk.f32.gmra.mrb[36].mxu1 %vm345_vm1, %v8511_v38  ;;  %7159 = vmatmul.mubr.msk.f32.gmra.mrb[12].mxu0 %vm345_vm1, %v3720_v10  ;;  %v3725_v38 = vld [vmem:[#allocation2 + $0xc0] sm:$0xff]  ;;  %v4711_v10 = vld [vmem:[#allocation2 + $0x32] sm:$0xff] }
 0x134   : > { %6827 = vmatprep.mubr.msk.f32.mxu1 %vm345_vm1, %v8521_v40  ;;  %7161 = vmatprep.mubr.msk.f32.mxu0 %vm345_vm1, %v3721_v25  ;;  %v3726_v40 = vld [vmem:[#allocation2 + $0xc8] sm:$0xff] }
 0x135   : > { %v2084_v25 = vld [vmem:[#allocation2 + $0xe1] sm:$0xff] }
 0x137   : > { %6828 = vmatmul.mubr.msk.f32.gmra.mrb[38].mxu1 %vm345_vm1, %v8523_v42  ;;  %7162 = vmatmul.mubr.msk.f32.gmra.mrb[14].mxu0 %vm345_vm1, %v3722_v29  ;;  %v3727_v42 = vld [vmem:[#allocation2 + $0xd0] sm:$0xff]  ;;  %v4712_v29 = vld [vmem:[#allocation2 + $0x3a] sm:$0xff] }
 0x138   : > { %6830 = vmatprep.mubr.msk.f32.mxu1 %vm345_vm1, %v8533_v44  ;;  %7164 = vmatprep.mubr.msk.f32.mxu0 %vm345_vm1, %v3723_v32  ;;  %v2059_v44 = vld [vmem:[#allocation2 + $0x19] sm:$0xff]  ;;  %v2085_v32 = vld [vmem:[#allocation2 + $0xe9] sm:$0xff] }
 0x13b   : > { %6831 = vmatmul.mubr.msk.f32.gmra.mrb[40].mxu1 %vm345_vm1, %v8535_v46  ;;  %7165 = vmatmul.mubr.msk.f32.gmra.mrb[16].mxu0 %vm345_vm1, %v3724_v34  ;;  %v2060_v46 = vld [vmem:[#allocation2 + $0x21] sm:$0xff] }
 0x13c   : > { %6833 = vmatprep.mubr.msk.f32.mxu1 %vm345_vm1, %v8545_v48  ;;  %7167 = vmatprep.mubr.msk.f32.mxu0 %vm345_vm1, %v3725_v38  ;;  %v2061_v48 = vld [vmem:[#allocation2 + $0x29] sm:$0xff]  ;;  %v2086_v38 = vld [vmem:[#allocation2 + $0xf1] sm:$0xff] }
 0x13d   : > { %v4713_v34 = vld [vmem:[#allocation2 + $0x42] sm:$0xff] }
 0x13f   : > { %6834 = vmatmul.mubr.msk.f32.gmra.mrb[42].mxu1 %vm345_vm1, %v8547_v50  ;;  %7168 = vmatmul.mubr.msk.f32.gmra.mrb[18].mxu0 %vm345_vm1, %v3726_v40  ;;  %v7735_v50 = vld [vmem:[%s9323_s2 + $0xc] sm:$0xf] }
 0x140   : > { %6836 = vmatprep.mubr.msk.f32.mxu1 %vm345_vm1, %v8557_v53  ;;  %7170 = vmatprep.mubr.msk.f32.mxu0 %vm345_vm1, %v3727_v42  ;;  %v2062_v53 = vld [vmem:[#allocation2 + $0x31] sm:$0xff]  ;;  %v2087_v42 = vld [vmem:[#allocation2 + $0xf9] sm:$0xff] }
 0x141   : > { %v4714_v40 = vld [vmem:[#allocation2 + $0x4a] sm:$0xff] }
 0x143   : > { %6837 = vmatmul.mubr.msk.f32.gmra.mrb[44].mxu1 %vm345_vm1, %v8559_v59  ;;  %7171 = vmatmul.mubr.msk.f32.gmra.mrb[20].mxu0 %vm345_vm1, %v8607_v23  ;;  %v2063_v59 = vld [vmem:[#allocation2 + $0x39] sm:$0xff] }
 0x144   : > { %6839 = vmatprep.mubr.msk.f32.mxu1 %vm345_vm1, %v8569_v63  ;;  %7173 = vmatprep.mubr.msk.f32.mxu0 %vm345_vm1, %v8611_v43  ;;  %v2064_v63 = vld [vmem:[#allocation2 + $0x41] sm:$0xff] }
 0x147   : > { %6840 = vmatmul.mubr.msk.f32.gmra.mrb[46].mxu1 %vm345_vm1, %v8571_v6  ;;  %7174 = vmatmul.mubr.msk.f32.gmra.mrb[22].mxu0 %vm345_vm1, %v8623_v45  ;;  %v2065_v6 = vld [vmem:[#allocation2 + $0x49] sm:$0xff] }
 0x148   : > { %6844 = vmatprep.mubr.msk.f32.mxu1 %vm345_vm1, %v2059_v44  ;;  %7176 = vmatprep.mubr.msk.f32.mxu0 %vm345_vm1, %v8625_v47  ;;  %v4715_v44 = vld [vmem:[#allocation2 + $0x52] sm:$0xff] }
 0x14b   : > { %6845 = vmatmul.mubr.msk.f32.vlgmr.msra.gmra.mrb[0].mxu1 %vm345_vm1, %v2060_v46  ;;  %7177 = vmatmul.mubr.msk.f32.gmra.mrb[24].mxu0 %vm345_vm1, %v8635_v49  ;;  %v2088_v46 = vld [vmem:[#allocation2 + $0x101] sm:$0xff] }
 0x14c   : > { %7287 = vmatpush3.msk.msra.mxu1 %vm650_vm0, %v7735_v50  ;;  %6847 = vmatprep.mubr.msk.f32.mxu1 %vm345_vm1, %v2061_v48  ;;  %v4716_v48 = vld [vmem:[#allocation2 + $0x5a] sm:$0xff]  ;;  %v2089_v50 = vld [vmem:[#allocation2 + $0x109] sm:$0xff] }
 0x14d   : > { %7179 = vmatprep.mubr.msk.f32.mxu0 %vm345_vm1, %v8637_v28 }
 0x14f   : > { %6848 = vmatmul.mubr.msk.f32.gmra.mrb[2].mxu1 %vm345_vm1, %v2062_v53  ;;  %7180 = vmatmul.mubr.msk.f32.gmra.mrb[26].mxu0 %vm345_vm1, %v8647_v52  ;;  %v4717_v53 = vld [vmem:[#allocation2 + $0x62] sm:$0xff] }
 0x150   : > { %6850 = vmatprep.mubr.msk.f32.mxu1 %vm345_vm1, %v2063_v59  ;;  %7182 = vmatprep.mubr.msk.f32.mxu0 %vm345_vm1, %v8649_v57  ;;  %v2090_v59 = vld [vmem:[#allocation2 + $0x111] sm:$0xff] }
 0x153   : > { %6851 = vmatmul.mubr.msk.f32.gmra.mrb[4].mxu1 %vm345_vm1, %v2064_v63  ;;  %7183 = vmatmul.mubr.msk.f32.gmra.mrb[28].mxu0 %vm345_vm1, %v8659_v62  ;;  %v4718_v63 = vld [vmem:[#allocation2 + $0x6a] sm:$0xff] }
 0x154   : > { %6853 = vmatprep.mubr.msk.f32.mxu1 %vm345_vm1, %v2065_v6  ;;  %7185 = vmatprep.mubr.msk.f32.mxu0 %vm345_vm1, %v8661_v5  ;;  %v2091_v6 = vld [vmem:[#allocation2 + $0x119] sm:$0xff] }
 0x157   : > { %6854 = vmatmul.mubr.msk.f32.gmra.mrb[6].mxu1 %vm345_vm1, %v2066_v11  ;;  %7186 = vmatmul.mubr.msk.f32.gmra.mrb[30].mxu0 %vm345_vm1, %v8671_v8  ;;  %v4719_v11 = vld [vmem:[#allocation2 + $0x72] sm:$0xff] }
 0x158   : > { %6856 = vmatprep.mubr.msk.f32.mxu1 %vm345_vm1, %v2067_v2  ;;  %7188 = vmatprep.mubr.msk.f32.mxu0 %vm345_vm1, %v8673_v12  ;;  %v2092_v2 = vld [vmem:[#allocation2 + $0x121] sm:$0xff] }
 0x15b   : > { %6857 = vmatmul.mubr.msk.f32.gmra.mrb[8].mxu1 %vm345_vm1, %v2068_v36  ;;  %7189 = vmatmul.mubr.msk.f32.gmra.mrb[32].mxu0 %vm345_vm1, %v8683_v14  ;;  %v4720_v36 = vld [vmem:[#allocation2 + $0x7a] sm:$0xff] }
 0x15c   : > { %6859 = vmatprep.mubr.msk.f32.mxu1 %vm345_vm1, %v2069_v9  ;;  %7191 = vmatprep.mubr.msk.f32.mxu0 %vm345_vm1, %v8685_v19  ;;  %v2093_v9 = vld [vmem:[#allocation2 + $0x129] sm:$0xff] }
 0x15f   : > { %6860 = vmatmul.mubr.msk.f32.gmra.mrb[10].mxu1 %vm345_vm1, %v2070_v13  ;;  %7192 = vmatmul.mubr.msk.f32.gmra.mrb[34].mxu0 %vm345_vm1, %v8695_v22  ;;  %v4721_v13 = vld [vmem:[#allocation2 + $0x82] sm:$0xff] }
 0x160   : > { %6862 = vmatprep.mubr.msk.f32.mxu1 %vm345_vm1, %v2071_v15  ;;  %7194 = vmatprep.mubr.msk.f32.mxu0 %vm345_vm1, %v8697_v26  ;;  %v2094_v15 = vld [vmem:[#allocation2 + $0x131] sm:$0xff] }
 0x163   : > { %6863 = vmatmul.mubr.msk.f32.gmra.mrb[12].mxu1 %vm345_vm1, %v2072_v55  ;;  %7195 = vmatmul.mubr.msk.f32.gmra.mrb[36].mxu0 %vm345_vm1, %v8707_v33  ;;  %v4722_v55 = vld [vmem:[#allocation2 + $0x8a] sm:$0xff] }
 0x164   : > { %6865 = vmatprep.mubr.msk.f32.mxu1 %vm345_vm1, %v2073_v56  ;;  %7197 = vmatprep.mubr.msk.f32.mxu0 %vm345_vm1, %v8709_v37  ;;  %v2095_v56 = vld [vmem:[#allocation2 + $0x139] sm:$0xff] }
 0x167   : > { %6866 = vmatmul.mubr.msk.f32.gmra.mrb[14].mxu1 %vm345_vm1, %v2074_v58  ;;  %7198 = vmatmul.mubr.msk.f32.gmra.mrb[38].mxu0 %vm345_vm1, %v8719_v41  ;;  %v4723_v58 = vld [vmem:[#allocation2 + $0x92] sm:$0xff] }
 0x168   : > { %6868 = vmatprep.mubr.msk.f32.mxu1 %vm345_vm1, %v2075_v60  ;;  %7200 = vmatprep.mubr.msk.f32.mxu0 %vm345_vm1, %v8721_v51  ;;  %v2096_v60 = vld [vmem:[#allocation2 + $0x141] sm:$0xff] }
 0x16b   : > { %6869 = vmatmul.mubr.msk.f32.gmra.mrb[16].mxu1 %vm345_vm1, %v2076_v0  ;;  %7201 = vmatmul.mubr.msk.f32.gmra.mrb[40].mxu0 %vm345_vm1, %v8731_v54  ;;  %v4724_v0 = vld [vmem:[#allocation2 + $0x9a] sm:$0xff] }
 0x16c   : > { %6871 = vmatprep.mubr.msk.f32.mxu1 %vm345_vm1, %v2077_v3  ;;  %7203 = vmatprep.mubr.msk.f32.mxu0 %vm345_vm1, %v8969_v16  ;;  %v2097_v3 = vld [vmem:[#allocation2 + $0x149] sm:$0xff] }
 0x16f   : > { %6872 = vmatmul.mubr.msk.f32.gmra.mrb[18].mxu1 %vm345_vm1, %v2078_v17  ;;  %7204 = vmatmul.mubr.msk.f32.gmra.mrb[42].mxu0 %vm345_vm1, %v8977_v21  ;;  %v4725_v17 = vld [vmem:[#allocation2 + $0xa2] sm:$0xff] }
 0x170   : > { %6874 = vmatprep.mubr.msk.f32.mxu1 %vm345_vm1, %v2079_v61  ;;  %7206 = vmatprep.mubr.msk.f32.mxu0 %vm345_vm1, %v8979_v35  ;;  %v2098_v61 = vld [vmem:[#allocation2 + $0x151] sm:$0xff] }
 0x173   : > { %6875 = vmatmul.mubr.msk.f32.gmra.mrb[20].mxu1 %vm345_vm1, %v2080_v27  ;;  %7207 = vmatmul.mubr.msk.f32.gmra.mrb[44].mxu0 %vm345_vm1, %v3752_v39  ;;  %v4726_v27 = vld [vmem:[#allocation2 + $0xaa] sm:$0xff]  ;;  %v2099_v39 = vld [vmem:[#allocation2 + $0x159] sm:$0xff] }
 0x174   : > { %6877 = vmatprep.mubr.msk.f32.mxu1 %vm345_vm1, %v2081_v20  ;;  %7209 = vmatprep.mubr.msk.f32.mxu0 %vm345_vm1, %v3753_v24  ;;  %v4727_v20 = vld [vmem:[#allocation2 + $0xb2] sm:$0xff]  ;;  %v2100_v24 = vld [vmem:[#allocation2 + $0x161] sm:$0xff] }
 0x177   : > { %6878 = vmatmul.mubr.msk.f32.gmra.mrb[22].mxu1 %vm345_vm1, %v2082_v30  ;;  %7210 = vmatmul.mubr.msk.f32.gmra.mrb[46].mxu0 %vm345_vm1, %v3754_v7  ;;  %v4728_v30 = vld [vmem:[#allocation2 + $0xba] sm:$0xff]  ;;  %v2101_v7 = vld [vmem:[#allocation2 + $0x169] sm:$0xff] }
 0x178   : > { %6880 = vmatprep.mubr.msk.f32.mxu1 %vm345_vm1, %v2083_v18  ;;  %7214 = vmatprep.mubr.msk.f32.mxu0 %vm345_vm1, %v4711_v10  ;;  %v4729_v18 = vld [vmem:[#allocation2 + $0xc2] sm:$0xff]  ;;  %v2102_v10 = vld [vmem:[#allocation2 + $0x171] sm:$0xff] }
 0x17b   : > { %6881 = vmatmul.mubr.msk.f32.gmra.mrb[24].mxu1 %vm345_vm1, %v2084_v25  ;;  %7215 = vmatmul.mubr.msk.f32.vlgmr.msra.gmra.mrb[0].mxu0 %vm345_vm1, %v4712_v29  ;;  %v4730_v25 = vld [vmem:[#allocation2 + $0xca] sm:$0xff]  ;;  %v2103_v29 = vld [vmem:[#allocation2 + $0x179] sm:$0xff] }
 0x17c   : > { %6883 = vmatprep.mubr.msk.f32.mxu1 %vm345_vm1, %v2085_v32  ;;  %7217 = vmatprep.mubr.msk.f32.mxu0 %vm345_vm1, %v4713_v34  ;;  %v4731_v32 = vld [vmem:[#allocation2 + $0xd2] sm:$0xff]  ;;  %v4732_v34 = vld [vmem:[#allocation2 + $0xda] sm:$0xff] }
 0x17f   : > { %6884 = vmatmul.mubr.msk.f32.gmra.mrb[26].mxu1 %vm345_vm1, %v2086_v38  ;;  %7218 = vmatmul.mubr.msk.f32.gmra.mrb[2].mxu0 %vm345_vm1, %v4714_v40  ;;  %v4733_v38 = vld [vmem:[#allocation2 + $0xe2] sm:$0xff]  ;;  %v4734_v40 = vld [vmem:[#allocation2 + $0xea] sm:$0xff] }
 0x180   : > { %6886 = vmatprep.mubr.msk.f32.mxu1 %vm345_vm1, %v2087_v42  ;;  %7220 = vmatprep.mubr.msk.f32.mxu0 %vm345_vm1, %v4715_v44  ;;  %v4735_v42 = vld [vmem:[#allocation2 + $0xf2] sm:$0xff]  ;;  %v4737_v44 = vld [vmem:[#allocation2 + $0x102] sm:$0xff] }
 0x183   : > { %6887 = vmatmul.mubr.msk.f32.gmra.mrb[28].mxu1 %vm345_vm1, %v2088_v46  ;;  %7221 = vmatmul.mubr.msk.f32.gmra.mrb[4].mxu0 %vm345_vm1, %v4716_v48 }
 0x184   : > { %6889 = vmatprep.mubr.msk.f32.mxu1 %vm345_vm1, %v2089_v50  ;;  %7223 = vmatprep.mubr.msk.f32.mxu0 %vm345_vm1, %v4717_v53 }
 0x187   : > { %6890 = vmatmul.mubr.msk.f32.gmra.mrb[30].mxu1 %vm345_vm1, %v2090_v59  ;;  %7224 = vmatmul.mubr.msk.f32.gmra.mrb[6].mxu0 %vm345_vm1, %v4718_v63 }
 0x188   : > { %6892 = vmatprep.mubr.msk.f32.mxu1 %vm345_vm1, %v2091_v6  ;;  %7226 = vmatprep.mubr.msk.f32.mxu0 %vm345_vm1, %v4719_v11 }
 0x18b   : > { %6893 = vmatmul.mubr.msk.f32.gmra.mrb[32].mxu1 %vm345_vm1, %v2092_v2  ;;  %7227 = vmatmul.mubr.msk.f32.gmra.mrb[8].mxu0 %vm345_vm1, %v4720_v36 }
 0x18c   : > { %6895 = vmatprep.mubr.msk.f32.mxu1 %vm345_vm1, %v2093_v9  ;;  %7229 = vmatprep.mubr.msk.f32.mxu0 %vm345_vm1, %v4721_v13 }
 0x18f   : > { %6896 = vmatmul.mubr.msk.f32.gmra.mrb[34].mxu1 %vm345_vm1, %v2094_v15  ;;  %7230 = vmatmul.mubr.msk.f32.gmra.mrb[10].mxu0 %vm345_vm1, %v4722_v55 }
 0x190   : > { %6898 = vmatprep.mubr.msk.f32.mxu1 %vm345_vm1, %v2095_v56  ;;  %7232 = vmatprep.mubr.msk.f32.mxu0 %vm345_vm1, %v4723_v58 }
 0x193   : > { %6899 = vmatmul.mubr.msk.f32.gmra.mrb[36].mxu1 %vm345_vm1, %v2096_v60  ;;  %7233 = vmatmul.mubr.msk.f32.gmra.mrb[12].mxu0 %vm345_vm1, %v4724_v0 }
 0x194   : > { %6901 = vmatprep.mubr.msk.f32.mxu1 %vm345_vm1, %v2097_v3  ;;  %7235 = vmatprep.mubr.msk.f32.mxu0 %vm345_vm1, %v4725_v17 }
 0x197   : > { %6902 = vmatmul.mubr.msk.f32.gmra.mrb[38].mxu1 %vm345_vm1, %v2098_v61  ;;  %7236 = vmatmul.mubr.msk.f32.gmra.mrb[14].mxu0 %vm345_vm1, %v4726_v27  ;;  %v9150_v61 = vld [vmem:[%s9324_s3] ss:$0 sm:$0xff] }
 0x198   : > { %6904 = vmatprep.mubr.msk.f32.mxu1 %vm345_vm1, %v2099_v39  ;;  %7238 = vmatprep.mubr.msk.f32.mxu0 %vm345_vm1, %v4727_v20 }
 0x19b   : > { %6905 = vmatmul.mubr.msk.f32.gmra.mrb[40].mxu1 %vm345_vm1, %v2100_v24  ;;  %7239 = vmatmul.mubr.msk.f32.gmra.mrb[16].mxu0 %vm345_vm1, %v4728_v30 }
 0x19c   : > { %6907 = vmatprep.mubr.msk.f32.mxu1 %vm345_vm1, %v2101_v7  ;;  %7241 = vmatprep.mubr.msk.f32.mxu0 %vm345_vm1, %v4729_v18 }
 0x19f   : > { %6908 = vmatmul.mubr.msk.f32.gmra.mrb[42].mxu1 %vm345_vm1, %v2102_v10  ;;  %7242 = vmatmul.mubr.msk.f32.gmra.mrb[18].mxu0 %vm345_vm1, %v4730_v25 }
 0x1a0   : > { %6910 = vmatprep.mubr.msk.f32.mxu1 %vm345_vm1, %v2103_v29  ;;  %7244 = vmatprep.mubr.msk.f32.mxu0 %vm345_vm1, %v4731_v32 }
 0x1a3   : > { %6911 = vmatmul.mubr.msk.f32.gmra.mrb[44].mxu1 %vm345_vm1, %v8806_v1  ;;  %7245 = vmatmul.mubr.msk.f32.gmra.mrb[20].mxu0 %vm345_vm1, %v4732_v34  ;;  %v4736_v1 = vld [vmem:[#allocation2 + $0xfa] sm:$0xff] }
 0x1a4   : > { %6913 = vmatprep.mubr.msk.f32.mxu1 %vm345_vm1, %v8816_v31  ;;  %7247 = vmatprep.mubr.msk.f32.mxu0 %vm345_vm1, %v4733_v38  ;;  %v4738_v31 = vld [vmem:[#allocation2 + $0x10a] sm:$0xff] }
 0x1a7   : > { %6914 = vmatmul.mubr.msk.f32.gmra.mrb[46].mxu1 %vm345_vm1, %v8818_v4  ;;  %7248 = vmatmul.mubr.msk.f32.gmra.mrb[22].mxu0 %vm345_vm1, %v4734_v40  ;;  %v4739_v4 = vld [vmem:[#allocation2 + $0x112] sm:$0xff] }
 0x1a8   : > { %6954 = vmatprep.mubr.msk.f32.mxu1 %vm345_vm1, %v8607_v23  ;;  %7250 = vmatprep.mubr.msk.f32.mxu0 %vm345_vm1, %v4735_v42  ;;  %v4740_v23 = vld [vmem:[#allocation2 + $0x11a] sm:$0xff] }
 0x1ab   : > { %6955 = vmatmul.mubr.msk.f32.vlgmr.msra.gmra.mrb[24].mxu1 %vm345_vm1, %v8611_v43  ;;  %7251 = vmatmul.mubr.msk.f32.gmra.mrb[24].mxu0 %vm345_vm1, %v4736_v1  ;;  %v4741_v43 = vld [vmem:[#allocation2 + $0x122] sm:$0xff] }
 0x1ac   : > { %6957 = vmatprep.mubr.msk.f32.mxu1 %vm345_vm1, %v8623_v45  ;;  %7253 = vmatprep.mubr.msk.f32.mxu0 %vm345_vm1, %v4737_v44  ;;  %v4742_v45 = vld [vmem:[#allocation2 + $0x12a] sm:$0xff] }
 0x1af   : > { %6958 = vmatmul.mubr.msk.f32.gmra.mrb[26].mxu1 %vm345_vm1, %v8625_v47  ;;  %7254 = vmatmul.mubr.msk.f32.gmra.mrb[26].mxu0 %vm345_vm1, %v4738_v31  ;;  %v4743_v47 = vld [vmem:[#allocation2 + $0x132] sm:$0xff] }
 0x1b0   : > { %6960 = vmatprep.mubr.msk.f32.mxu1 %vm345_vm1, %v8635_v49  ;;  %7256 = vmatprep.mubr.msk.f32.mxu0 %vm345_vm1, %v4739_v4  ;;  %v4744_v49 = vld [vmem:[#allocation2 + $0x13a] sm:$0xff] }
 0x1b3   : > { %6961 = vmatmul.mubr.msk.f32.gmra.mrb[28].mxu1 %vm345_vm1, %v8637_v28  ;;  %7257 = vmatmul.mubr.msk.f32.gmra.mrb[28].mxu0 %vm345_vm1, %v4740_v23  ;;  %v4745_v28 = vld [vmem:[#allocation2 + $0x142] sm:$0xff] }
 0x1b4   : > { %6963 = vmatprep.mubr.msk.f32.mxu1 %vm345_vm1, %v8647_v52  ;;  %7259 = vmatprep.mubr.msk.f32.mxu0 %vm345_vm1, %v4741_v43  ;;  %v4746_v52 = vld [vmem:[#allocation2 + $0x14a] sm:$0xff] }
 0x1b7   : > { %6964 = vmatmul.mubr.msk.f32.gmra.mrb[30].mxu1 %vm345_vm1, %v8649_v57  ;;  %7260 = vmatmul.mubr.msk.f32.gmra.mrb[30].mxu0 %vm345_vm1, %v4742_v45  ;;  %v4747_v57 = vld [vmem:[#allocation2 + $0x152] sm:$0xff] }
 0x1b8   : > { %6966 = vmatprep.mubr.msk.f32.mxu1 %vm345_vm1, %v8659_v62  ;;  %7262 = vmatprep.mubr.msk.f32.mxu0 %vm345_vm1, %v4743_v47  ;;  %v4748_v62 = vld [vmem:[#allocation2 + $0x15a] sm:$0xff] }
 0x1bb   : > { %6967 = vmatmul.mubr.msk.f32.gmra.mrb[32].mxu1 %vm345_vm1, %v8661_v5  ;;  %7263 = vmatmul.mubr.msk.f32.gmra.mrb[32].mxu0 %vm345_vm1, %v4744_v49  ;;  %v4749_v5 = vld [vmem:[#allocation2 + $0x162] sm:$0xff] }
 0x1bc   : > { %6969 = vmatprep.mubr.msk.f32.mxu1 %vm345_vm1, %v8671_v8  ;;  %7265 = vmatprep.mubr.msk.f32.mxu0 %vm345_vm1, %v4745_v28  ;;  %v4750_v8 = vld [vmem:[#allocation2 + $0x16a] sm:$0xff] }
 0x1bf   : > { %6970 = vmatmul.mubr.msk.f32.gmra.mrb[34].mxu1 %vm345_vm1, %v8673_v12  ;;  %7266 = vmatmul.mubr.msk.f32.gmra.mrb[34].mxu0 %vm345_vm1, %v4746_v52  ;;  %v4751_v12 = vld [vmem:[#allocation2 + $0x172] sm:$0xff] }
 0x1c0   : > { %6972 = vmatprep.mubr.msk.f32.mxu1 %vm345_vm1, %v8683_v14  ;;  %7268 = vmatprep.mubr.msk.f32.mxu0 %vm345_vm1, %v4747_v57  ;;  %v4752_v14 = vld [vmem:[#allocation2 + $0x17a] sm:$0xff] }
 0x1c3   : > { %6973 = vmatmul.mubr.msk.f32.gmra.mrb[36].mxu1 %vm345_vm1, %v8685_v19  ;;  %7269 = vmatmul.mubr.msk.f32.gmra.mrb[36].mxu0 %vm345_vm1, %v4748_v62  ;;  %v4753_v19 = vld [vmem:[#allocation2 + $0x182] sm:$0xff] }
 0x1c4   : > { %6975 = vmatprep.mubr.msk.f32.mxu1 %vm345_vm1, %v8695_v22  ;;  %7271 = vmatprep.mubr.msk.f32.mxu0 %vm345_vm1, %v4749_v5  ;;  %v4754_v22 = vld [vmem:[#allocation2 + $0x18a] sm:$0xff] }
 0x1c7   : > { %6976 = vmatmul.mubr.msk.f32.gmra.mrb[38].mxu1 %vm345_vm1, %v8697_v26  ;;  %7272 = vmatmul.mubr.msk.f32.gmra.mrb[38].mxu0 %vm345_vm1, %v4750_v8  ;;  %v4755_v26 = vld [vmem:[#allocation2 + $0x192] sm:$0xff] }
 0x1c8   : > { %6978 = vmatprep.mubr.msk.f32.mxu1 %vm345_vm1, %v8707_v33  ;;  %7274 = vmatprep.mubr.msk.f32.mxu0 %vm345_vm1, %v4751_v12  ;;  %v4756_v33 = vld [vmem:[#allocation2 + $0x19a] sm:$0xff] }
 0x1cb   : > { %6979 = vmatmul.mubr.msk.f32.gmra.mrb[40].mxu1 %vm345_vm1, %v8709_v37  ;;  %7275 = vmatmul.mubr.msk.f32.gmra.mrb[40].mxu0 %vm345_vm1, %v4752_v14  ;;  %v4757_v37 = vld [vmem:[#allocation2 + $0x1a2] sm:$0xff] }
 0x1cc   : > { %6981 = vmatprep.mubr.msk.f32.mxu1 %vm345_vm1, %v8719_v41  ;;  %7277 = vmatprep.mubr.msk.f32.mxu0 %vm345_vm1, %v4753_v19  ;;  %v4758_v41 = vld [vmem:[#allocation2 + $0x1aa] sm:$0xff] }
 0x1cf   : > { %6982 = vmatmul.mubr.msk.f32.gmra.mrb[42].mxu1 %vm345_vm1, %v8721_v51  ;;  %7278 = vmatmul.mubr.msk.f32.gmra.mrb[42].mxu0 %vm345_vm1, %v4754_v22 }
 0x1d0   : > { %6984 = vmatprep.mubr.msk.f32.mxu1 %vm345_vm1, %v8731_v54  ;;  %7280 = vmatprep.mubr.msk.f32.mxu0 %vm345_vm1, %v4755_v26 }
 0x1d3   : > { %6985 = vmatmul.mubr.msk.f32.gmra.mrb[44].mxu1 %vm345_vm1, %v8969_v16  ;;  %7281 = vmatmul.mubr.msk.f32.gmra.mrb[44].mxu0 %vm345_vm1, %v4756_v33 }
 0x1d4   : > { %6987 = vmatprep.mubr.msk.f32.mxu1 %vm345_vm1, %v8977_v21  ;;  %7283 = vmatprep.mubr.msk.f32.mxu0 %vm345_vm1, %v4757_v37 }
 0x1d7   : > { %6988 = vmatmul.mubr.msk.f32.gmra.mrb[46].mxu1 %vm345_vm1, %v8979_v35  ;;  %7284 = vmatmul.mubr.msk.f32.gmra.mrb[46].mxu0 %vm345_vm1, %v4758_v41 }
 0x21e   : > { %v6846_v51 = vpop.f32.mrb[0].mxu1 }
 0x21f   : > { %v2322_v54 = vpop.f32.mrb[1].mxu1 }
 0x222   : > { %v6849_v46 = vpop.f32.mrb[2].mxu1 }
 0x223   : > { %v2332_v48 = vpop.f32.mrb[3].mxu1 }
 0x226   : > { %v6852_v50 = vpop.f32.mrb[4].mxu1 }
 0x227   : > { %v2342_v53 = vpop.f32.mrb[5].mxu1 }
 0x22a   : > { %v6855_v16 = vpop.f32.mrb[6].mxu1 }
 0x22b   : > { %v2352_v59 = vpop.f32.mrb[7].mxu1 }
 0x22e   : > { %v6858_v63 = vpop.f32.mrb[8].mxu1 }
 0x22f   : > { %v2362_v6 = vpop.f32.mrb[9].mxu1 }
 0x232   : > { %v9116_v21 = vpop.f32.mrb[10].mxu1 }
 0x233   : > { %v9118_v11 = vpop.f32.mrb[11].mxu1 }
 0x236   : > { %v9120_v2 = vpop.f32.mrb[12].mxu1 }
 0x237   : > { %v9122_v35 = vpop.f32.mrb[13].mxu1 }
 0x23a   : > { %v9124_v36 = vpop.f32.mrb[14].mxu1 }
 0x23b   : > { %v9126_v9 = vpop.f32.mrb[15].mxu1 }
 0x23e   : > { %v9128_v13 = vpop.f32.mrb[16].mxu1 }
 0x23f   : > { %v9130_v15 = vpop.f32.mrb[17].mxu1 }
 0x242   : > { %v9132_v55 = vpop.f32.mrb[18].mxu1 }
 0x243   : > { %v9134_v56 = vpop.f32.mrb[19].mxu1 }
 0x246   : > { %v9136_v58 = vpop.f32.mrb[20].mxu1 }
 0x247   : > { %v9138_v60 = vpop.f32.mrb[21].mxu1 }
 0x24a   : > { %v9140_v0 = vpop.f32.mrb[22].mxu1 }
 0x24b   : > { %v9142_v3 = vpop.f32.mrb[23].mxu1 }
 0x24e   : > { %v7216_v17 = vpop.f32.mrb[0].mxu0 }
 0x24f   : > { %v7288_v27 = vadd.f32 %v7216_v17, %v6846_v51  ;;  %v4974_v39 = vpop.f32.mrb[1].mxu0 }
 0x250   : > { %v7289_v20 = vadd.f32 %v4974_v39, %v2322_v54 }
 0x251   : > { %v5461_v24 = vadd.f32 %v7288_v27, %v9150_v61 }
 0x252   : > { %v5460_v30 = vadd.f32 %v7289_v20, %v9150_v61  ;;  %v7219_v7 = vpop.f32.mrb[2].mxu0 }
 0x253   : > { %v5509_v18 = vmax.f32 %v5461_v24, 0.0  ;;  %v7290_v10 = vadd.f32 %v7219_v7, %v6849_v46  ;;  %v4984_v25 = vpop.f32.mrb[3].mxu0 }
 0x254   : > { %v5508_v29 = vmax.f32 %v5460_v30, 0.0  ;;  %v7291_v32 = vadd.f32 %v4984_v25, %v2332_v48 }
 0x255   : > { %5557 = vst [vmem:[%s9154_s30 + $0x8] sm:$0xff] %v5509_v18  ;;  %v5463_v34 = vadd.f32 %v7290_v10, %v9150_v61 }
 0x256   : > { %5556 = vst [vmem:[%s9154_s30] sm:$0xff] %v5508_v29  ;;  %v5462_v38 = vadd.f32 %v7291_v32, %v9150_v61  ;;  %v7222_v40 = vpop.f32.mrb[4].mxu0 }
 0x257   : > { %v5511_v42 = vmax.f32 %v5463_v34, 0.0  ;;  %v7292_v1 = vadd.f32 %v7222_v40, %v6852_v50  ;;  %v4994_v44 = vpop.f32.mrb[5].mxu0 }
 0x258   : > { %v5510_v31 = vmax.f32 %v5462_v38, 0.0  ;;  %v7293_v4 = vadd.f32 %v4994_v44, %v2342_v53 }
 0x259   : > { %5559 = vst [vmem:[%s9154_s30 + $0x18] sm:$0xff] %v5511_v42  ;;  %v5465_v23 = vadd.f32 %v7292_v1, %v9150_v61 }
 0x25a   : > { %5558 = vst [vmem:[%s9154_s30 + $0x10] sm:$0xff] %v5510_v31  ;;  %v5464_v43 = vadd.f32 %v7293_v4, %v9150_v61  ;;  %v7225_v45 = vpop.f32.mrb[6].mxu0 }
 0x25b   : > { %v5513_v47 = vmax.f32 %v5465_v23, 0.0  ;;  %v7294_v49 = vadd.f32 %v7225_v45, %v6855_v16  ;;  %v5004_v28 = vpop.f32.mrb[7].mxu0 }
 0x25c   : > { %v5512_v52 = vmax.f32 %v5464_v43, 0.0  ;;  %v7295_v57 = vadd.f32 %v5004_v28, %v2352_v59 }
 0x25d   : > { %5561 = vst [vmem:[%s9154_s30 + $0x28] sm:$0xff] %v5513_v47  ;;  %v5467_v62 = vadd.f32 %v7294_v49, %v9150_v61 }
 0x25e   : > { %5560 = vst [vmem:[%s9154_s30 + $0x20] sm:$0xff] %v5512_v52  ;;  %v5466_v5 = vadd.f32 %v7295_v57, %v9150_v61  ;;  %v7228_v8 = vpop.f32.mrb[8].mxu0 }
 0x25f   : > { %v5515_v12 = vmax.f32 %v5467_v62, 0.0  ;;  %v7296_v14 = vadd.f32 %v7228_v8, %v6858_v63  ;;  %v5014_v19 = vpop.f32.mrb[9].mxu0 }
 0x260   : > { %v5514_v22 = vmax.f32 %v5466_v5, 0.0  ;;  %v7297_v26 = vadd.f32 %v5014_v19, %v2362_v6 }
 0x261   : > { %5563 = vst [vmem:[%s9154_s30 + $0x38] sm:$0xff] %v5515_v12  ;;  %v5469_v33 = vadd.f32 %v7296_v14, %v9150_v61 }
 0x262   : > { %5562 = vst [vmem:[%s9154_s30 + $0x30] sm:$0xff] %v5514_v22  ;;  %v5468_v37 = vadd.f32 %v7297_v26, %v9150_v61  ;;  %v7231_v41 = vpop.f32.mrb[10].mxu0 }
 0x263   : > { %v5517_v51 = vmax.f32 %v5469_v33, 0.0  ;;  %v7298_v54 = vadd.f32 %v7231_v41, %v9116_v21  ;;  %v5024_v46 = vpop.f32.mrb[11].mxu0 }
 0x264   : > { %v5516_v48 = vmax.f32 %v5468_v37, 0.0  ;;  %v7299_v50 = vadd.f32 %v5024_v46, %v9118_v11 }
 0x265   : > { %5565 = vst [vmem:[%s9154_s30 + $0x48] sm:$0xff] %v5517_v51  ;;  %v5471_v53 = vadd.f32 %v7298_v54, %v9150_v61 }
 0x266   : > { %5564 = vst [vmem:[%s9154_s30 + $0x40] sm:$0xff] %v5516_v48  ;;  %v5470_v16 = vadd.f32 %v7299_v50, %v9150_v61  ;;  %v7234_v59 = vpop.f32.mrb[12].mxu0 }
 0x267   : > { %v5519_v63 = vmax.f32 %v5471_v53, 0.0  ;;  %v7300_v6 = vadd.f32 %v7234_v59, %v9120_v2  ;;  %v5034_v17 = vpop.f32.mrb[13].mxu0 }
 0x268   : > { %v5518_v27 = vmax.f32 %v5470_v16, 0.0  ;;  %v7301_v21 = vadd.f32 %v5034_v17, %v9122_v35 }
 0x269   : > { %5567 = vst [vmem:[%s9154_s30 + $0x58] sm:$0xff] %v5519_v63  ;;  %v5473_v39 = vadd.f32 %v7300_v6, %v9150_v61 }
 0x26a   : > { %5566 = vst [vmem:[%s9154_s30 + $0x50] sm:$0xff] %v5518_v27  ;;  %v5472_v11 = vadd.f32 %v7301_v21, %v9150_v61  ;;  %v7237_v20 = vpop.f32.mrb[14].mxu0 }
 0x26b   : > { %v5521_v24 = vmax.f32 %v5473_v39, 0.0  ;;  %v7302_v30 = vadd.f32 %v7237_v20, %v9124_v36  ;;  %v5044_v7 = vpop.f32.mrb[15].mxu0 }
 0x26c   : > { %v5520_v18 = vmax.f32 %v5472_v11, 0.0  ;;  %v7303_v2 = vadd.f32 %v5044_v7, %v9126_v9 }
 0x26d   : > { %5569 = vst [vmem:[%s9154_s30 + $0x68] sm:$0xff] %v5521_v24  ;;  %v5475_v10 = vadd.f32 %v7302_v30, %v9150_v61 }
 0x26e   : > { %5568 = vst [vmem:[%s9154_s30 + $0x60] sm:$0xff] %v5520_v18  ;;  %v5474_v35 = vadd.f32 %v7303_v2, %v9150_v61  ;;  %v7240_v25 = vpop.f32.mrb[16].mxu0 }
 0x26f   : > { %v5523_v29 = vmax.f32 %v5475_v10, 0.0  ;;  %v7304_v32 = vadd.f32 %v7240_v25, %v9128_v13  ;;  %v5054_v34 = vpop.f32.mrb[17].mxu0 }
 0x270   : > { %v5522_v38 = vmax.f32 %v5474_v35, 0.0  ;;  %v7305_v36 = vadd.f32 %v5054_v34, %v9130_v15 }
 0x271   : > { %5571 = vst [vmem:[%s9154_s30 + $0x78] sm:$0xff] %v5523_v29  ;;  %v5477_v40 = vadd.f32 %v7304_v32, %v9150_v61 }
 0x272   : > { %5570 = vst [vmem:[%s9154_s30 + $0x70] sm:$0xff] %v5522_v38  ;;  %v5476_v9 = vadd.f32 %v7305_v36, %v9150_v61  ;;  %v7243_v42 = vpop.f32.mrb[18].mxu0 }
 0x273   : > { %v5525_v1 = vmax.f32 %v5477_v40, 0.0  ;;  %v7306_v44 = vadd.f32 %v7243_v42, %v9132_v55  ;;  %v5064_v31 = vpop.f32.mrb[19].mxu0 }
 0x274   : > { %v5524_v4 = vmax.f32 %v5476_v9, 0.0  ;;  %v7307_v13 = vadd.f32 %v5064_v31, %v9134_v56 }
 0x275   : > { %5573 = vst [vmem:[%s9154_s30 + $0x88] sm:$0xff] %v5525_v1  ;;  %v5479_v23 = vadd.f32 %v7306_v44, %v9150_v61 }
 0x276   : > { %5572 = vst [vmem:[%s9154_s30 + $0x80] sm:$0xff] %v5524_v4  ;;  %v5478_v15 = vadd.f32 %v7307_v13, %v9150_v61  ;;  %v7246_v43 = vpop.f32.mrb[20].mxu0 }
 0x277   : > { %v5527_v45 = vmax.f32 %v5479_v23, 0.0  ;;  %v7308_v47 = vadd.f32 %v7246_v43, %v9136_v58  ;;  %v5074_v49 = vpop.f32.mrb[21].mxu0 }
 0x278   : > { %v5526_v28 = vmax.f32 %v5478_v15, 0.0  ;;  %v7309_v55 = vadd.f32 %v5074_v49, %v9138_v60 }
 0x279   : > { %5575 = vst [vmem:[%s9154_s30 + $0x98] sm:$0xff] %v5527_v45  ;;  %v5481_v52 = vadd.f32 %v7308_v47, %v9150_v61 }
 0x27a   : > { %5574 = vst [vmem:[%s9154_s30 + $0x90] sm:$0xff] %v5526_v28  ;;  %v5480_v56 = vadd.f32 %v7309_v55, %v9150_v61  ;;  %v7249_v57 = vpop.f32.mrb[22].mxu0 }
 0x27b   : > { %v5529_v62 = vmax.f32 %v5481_v52, 0.0  ;;  %v7310_v5 = vadd.f32 %v7249_v57, %v9140_v0  ;;  %v5084_v8 = vpop.f32.mrb[23].mxu0 }
 0x27c   : > { %v5528_v12 = vmax.f32 %v5480_v56, 0.0  ;;  %v7311_v58 = vadd.f32 %v5084_v8, %v9142_v3 }
 0x27d   : > { %5577 = vst [vmem:[%s9154_s30 + $0xa8] sm:$0xff] %v5529_v62  ;;  %v5483_v14 = vadd.f32 %v7310_v5, %v9150_v61 }
 0x27e   : > { %5576 = vst [vmem:[%s9154_s30 + $0xa0] sm:$0xff] %v5528_v12  ;;  %v5482_v60 = vadd.f32 %v7311_v58, %v9150_v61  ;;  %v6956_v19 = vpop.f32.mrb[24].mxu1  ;;  %v7252_v22 = vpop.f32.mrb[24].mxu0 }
 0x27f   : > { %v5531_v26 = vmax.f32 %v5483_v14, 0.0  ;;  %v7312_v33 = vadd.f32 %v7252_v22, %v6956_v19  ;;  %v2894_v37 = vpop.f32.mrb[25].mxu1  ;;  %v5094_v41 = vpop.f32.mrb[25].mxu0 }
 0x280   : > { %v5530_v0 = vmax.f32 %v5482_v60, 0.0  ;;  %v7313_v51 = vadd.f32 %v5094_v41, %v2894_v37 }
 0x281   : > { %5579 = vst [vmem:[%s9154_s30 + $0xb8] sm:$0xff] %v5531_v26  ;;  %v5485_v54 = vadd.f32 %v7312_v33, %v9150_v61 }
 0x282   : > { %5578 = vst [vmem:[%s9154_s30 + $0xb0] sm:$0xff] %v5530_v0  ;;  %v5484_v3 = vadd.f32 %v7313_v51, %v9150_v61  ;;  %v6959_v46 = vpop.f32.mrb[26].mxu1  ;;  %v7255_v48 = vpop.f32.mrb[26].mxu0 }
 0x283   : > { %v5533_v50 = vmax.f32 %v5485_v54, 0.0  ;;  %v7314_v53 = vadd.f32 %v7255_v48, %v6959_v46  ;;  %v2904_v16 = vpop.f32.mrb[27].mxu1  ;;  %v5104_v59 = vpop.f32.mrb[27].mxu0 }
 0x284   : > { %v5532_v63 = vmax.f32 %v5484_v3, 0.0  ;;  %v7315_v6 = vadd.f32 %v5104_v59, %v2904_v16 }
 0x285   : > { %5581 = vst [vmem:[%s9154_s30 + $0xc8] sm:$0xff] %v5533_v50  ;;  %v5487_v17 = vadd.f32 %v7314_v53, %v9150_v61 }
 0x286   : > { %5580 = vst [vmem:[%s9154_s30 + $0xc0] sm:$0xff] %v5532_v63  ;;  %v5486_v27 = vadd.f32 %v7315_v6, %v9150_v61  ;;  %v6962_v21 = vpop.f32.mrb[28].mxu1  ;;  %v7258_v39 = vpop.f32.mrb[28].mxu0 }
 0x287   : > { %v5535_v11 = vmax.f32 %v5487_v17, 0.0  ;;  %v7316_v20 = vadd.f32 %v7258_v39, %v6962_v21  ;;  %v2914_v24 = vpop.f32.mrb[29].mxu1  ;;  %v5114_v30 = vpop.f32.mrb[29].mxu0 }
 0x288   : > { %v5534_v7 = vmax.f32 %v5486_v27, 0.0  ;;  %v7317_v18 = vadd.f32 %v5114_v30, %v2914_v24 }
 0x289   : > { %5583 = vst [vmem:[%s9154_s30 + $0xd8] sm:$0xff] %v5535_v11  ;;  %v5489_v2 = vadd.f32 %v7316_v20, %v9150_v61 }
 0x28a   : > { %5582 = vst [vmem:[%s9154_s30 + $0xd0] sm:$0xff] %v5534_v7  ;;  %v5488_v10 = vadd.f32 %v7317_v18, %v9150_v61  ;;  %v6965_v35 = vpop.f32.mrb[30].mxu1  ;;  %v7261_v25 = vpop.f32.mrb[30].mxu0 }
 0x28b   : > { %v5537_v29 = vmax.f32 %v5489_v2, 0.0  ;;  %v7318_v32 = vadd.f32 %v7261_v25, %v6965_v35  ;;  %v2924_v34 = vpop.f32.mrb[31].mxu1  ;;  %v5124_v38 = vpop.f32.mrb[31].mxu0 }
 0x28c   : > { %v5536_v36 = vmax.f32 %v5488_v10, 0.0  ;;  %v7319_v40 = vadd.f32 %v5124_v38, %v2924_v34 }
 0x28d   : > { %5585 = vst [vmem:[%s9154_s30 + $0xe8] sm:$0xff] %v5537_v29  ;;  %v5491_v9 = vadd.f32 %v7318_v32, %v9150_v61 }
 0x28e   : > { %5584 = vst [vmem:[%s9154_s30 + $0xe0] sm:$0xff] %v5536_v36  ;;  %v5490_v42 = vadd.f32 %v7319_v40, %v9150_v61  ;;  %v6968_v1 = vpop.f32.mrb[32].mxu1  ;;  %v7264_v44 = vpop.f32.mrb[32].mxu0 }
 0x28f   : > { %v5539_v31 = vmax.f32 %v5491_v9, 0.0  ;;  %v7320_v4 = vadd.f32 %v7264_v44, %v6968_v1  ;;  %v2934_v13 = vpop.f32.mrb[33].mxu1  ;;  %v5134_v23 = vpop.f32.mrb[33].mxu0 }
 0x290   : > { %v5538_v15 = vmax.f32 %v5490_v42, 0.0  ;;  %v7321_v43 = vadd.f32 %v5134_v23, %v2934_v13 }
 0x291   : > { %5587 = vst [vmem:[%s9154_s30 + $0xf8] sm:$0xff] %v5539_v31  ;;  %v5493_v45 = vadd.f32 %v7320_v4, %v9150_v61 }
 0x292   : > { %5586 = vst [vmem:[%s9154_s30 + $0xf0] sm:$0xff] %v5538_v15  ;;  %v5492_v47 = vadd.f32 %v7321_v43, %v9150_v61  ;;  %v6971_v49 = vpop.f32.mrb[34].mxu1  ;;  %v7267_v28 = vpop.f32.mrb[34].mxu0 }
 0x293   : > { %v5541_v55 = vmax.f32 %v5493_v45, 0.0  ;;  %v7322_v52 = vadd.f32 %v7267_v28, %v6971_v49  ;;  %v2944_v56 = vpop.f32.mrb[35].mxu1  ;;  %v5144_v57 = vpop.f32.mrb[35].mxu0 }
 0x294   : > { %v5540_v62 = vmax.f32 %v5492_v47, 0.0  ;;  %v7323_v5 = vadd.f32 %v5144_v57, %v2944_v56 }
 0x295   : > { %5589 = vst [vmem:[%s9154_s30 + $0x108] sm:$0xff] %v5541_v55  ;;  %v5495_v8 = vadd.f32 %v7322_v52, %v9150_v61 }
 0x296   : > { %5588 = vst [vmem:[%s9154_s30 + $0x100] sm:$0xff] %v5540_v62  ;;  %v5494_v12 = vadd.f32 %v7323_v5, %v9150_v61  ;;  %v6974_v58 = vpop.f32.mrb[36].mxu1  ;;  %v7270_v14 = vpop.f32.mrb[36].mxu0 }
 0x297   : > { %v5543_v60 = vmax.f32 %v5495_v8, 0.0  ;;  %v7324_v19 = vadd.f32 %v7270_v14, %v6974_v58  ;;  %v2954_v22 = vpop.f32.mrb[37].mxu1  ;;  %v5154_v26 = vpop.f32.mrb[37].mxu0 }
 0x298   : > { %v5542_v33 = vmax.f32 %v5494_v12, 0.0  ;;  %v7325_v37 = vadd.f32 %v5154_v26, %v2954_v22 }
 0x299   : > { %5591 = vst [vmem:[%s9154_s30 + $0x118] sm:$0xff] %v5543_v60  ;;  %v5497_v41 = vadd.f32 %v7324_v19, %v9150_v61 }
 0x29a   : > { %5590 = vst [vmem:[%s9154_s30 + $0x110] sm:$0xff] %v5542_v33  ;;  %v5496_v0 = vadd.f32 %v7325_v37, %v9150_v61  ;;  %v6977_v51 = vpop.f32.mrb[38].mxu1  ;;  %v7273_v54 = vpop.f32.mrb[38].mxu0 }
 0x29b   : > { %v5545_v3 = vmax.f32 %v5497_v41, 0.0  ;;  %v7326_v46 = vadd.f32 %v7273_v54, %v6977_v51  ;;  %v2964_v48 = vpop.f32.mrb[39].mxu1  ;;  %v5164_v50 = vpop.f32.mrb[39].mxu0 }
 0x29c   : > { %v5544_v53 = vmax.f32 %v5496_v0, 0.0  ;;  %v7327_v16 = vadd.f32 %v5164_v50, %v2964_v48 }
 0x29d   : > { %5593 = vst [vmem:[%s9154_s30 + $0x128] sm:$0xff] %v5545_v3  ;;  %v5499_v59 = vadd.f32 %v7326_v46, %v9150_v61 }
 0x29e   : > { %5592 = vst [vmem:[%s9154_s30 + $0x120] sm:$0xff] %v5544_v53  ;;  %v5498_v63 = vadd.f32 %v7327_v16, %v9150_v61  ;;  %v6980_v6 = vpop.f32.mrb[40].mxu1  ;;  %v7276_v17 = vpop.f32.mrb[40].mxu0 }
 0x29f   : > { %v5547_v27 = vmax.f32 %v5499_v59, 0.0  ;;  %v7328_v21 = vadd.f32 %v7276_v17, %v6980_v6  ;;  %v2974_v39 = vpop.f32.mrb[41].mxu1  ;;  %v5174_v11 = vpop.f32.mrb[41].mxu0 }
 0x2a0   : > { %v5546_v20 = vmax.f32 %v5498_v63, 0.0  ;;  %v7329_v24 = vadd.f32 %v5174_v11, %v2974_v39 }
 0x2a1   : > { %5595 = vst [vmem:[%s9154_s30 + $0x138] sm:$0xff] %v5547_v27  ;;  %v5501_v30 = vadd.f32 %v7328_v21, %v9150_v61 }
 0x2a2   : > { %5594 = vst [vmem:[%s9154_s30 + $0x130] sm:$0xff] %v5546_v20  ;;  %v5500_v7 = vadd.f32 %v7329_v24, %v9150_v61  ;;  %v6983_v18 = vpop.f32.mrb[42].mxu1  ;;  %v7279_v2 = vpop.f32.mrb[42].mxu0 }
 0x2a3   : > { %v5549_v10 = vmax.f32 %v5501_v30, 0.0  ;;  %v7330_v35 = vadd.f32 %v7279_v2, %v6983_v18  ;;  %v2984_v25 = vpop.f32.mrb[43].mxu1  ;;  %v5184_v29 = vpop.f32.mrb[43].mxu0 }
 0x2a4   : > { %v5548_v32 = vmax.f32 %v5500_v7, 0.0  ;;  %v7331_v34 = vadd.f32 %v5184_v29, %v2984_v25 }
 0x2a5   : > { %5597 = vst [vmem:[%s9154_s30 + $0x148] sm:$0xff] %v5549_v10  ;;  %v5503_v38 = vadd.f32 %v7330_v35, %v9150_v61 }
 0x2a6   : > { %5596 = vst [vmem:[%s9154_s30 + $0x140] sm:$0xff] %v5548_v32  ;;  %v5502_v36 = vadd.f32 %v7331_v34, %v9150_v61  ;;  %v6986_v40 = vpop.f32.mrb[44].mxu1  ;;  %v7282_v9 = vpop.f32.mrb[44].mxu0 }
 0x2a7   : > { %v5551_v42 = vmax.f32 %v5503_v38, 0.0  ;;  %v7332_v1 = vadd.f32 %v7282_v9, %v6986_v40  ;;  %v2994_v44 = vpop.f32.mrb[45].mxu1  ;;  %v5194_v31 = vpop.f32.mrb[45].mxu0 }
 0x2a8   : > { %v5550_v4 = vmax.f32 %v5502_v36, 0.0  ;;  %v7333_v13 = vadd.f32 %v5194_v31, %v2994_v44 }
 0x2a9   : > { %5599 = vst [vmem:[%s9154_s30 + $0x158] sm:$0xff] %v5551_v42  ;;  %v5505_v23 = vadd.f32 %v7332_v1, %v9150_v61 }
 0x2aa   : > { %5598 = vst [vmem:[%s9154_s30 + $0x150] sm:$0xff] %v5550_v4  ;;  %v5504_v15 = vadd.f32 %v7333_v13, %v9150_v61  ;;  %v6989_v43 = vpop.f32.mrb[46].mxu1  ;;  %v7285_v45 = vpop.f32.mrb[46].mxu0 }
 0x2ab   : > { %v5553_v47 = vmax.f32 %v5505_v23, 0.0  ;;  %v7334_v49 = vadd.f32 %v7285_v45, %v6989_v43  ;;  %v3004_v28 = vpop.f32.mrb[47].mxu1  ;;  %v5204_v55 = vpop.f32.mrb[47].mxu0 }
 0x2ac   : > { %v5552_v52 = vmax.f32 %v5504_v15, 0.0  ;;  %v7335_v56 = vadd.f32 %v5204_v55, %v3004_v28 }
 0x2ad   : > { %5601 = vst [vmem:[%s9154_s30 + $0x168] sm:$0xff] %v5553_v47  ;;  %v5507_v57 = vadd.f32 %v7334_v49, %v9150_v61 }
 0x2ae   : > { %5600 = vst [vmem:[%s9154_s30 + $0x160] sm:$0xff] %v5552_v52  ;;  %v5506_v62 = vadd.f32 %v7335_v56, %v9150_v61 }
 0x2af   : > { %v5555_v5 = vmax.f32 %v5507_v57, 0.0 }
 0x2b0   : > { %v5554_v8 = vmax.f32 %v5506_v62, 0.0 }
 0x2b1   : > { %5603 = vst [vmem:[%s9154_s30 + $0x178] sm:$0xff] %v5555_v5 }
 0x2b2   : > { %5602 = vst [vmem:[%s9154_s30 + $0x170] sm:$0xff] %v5554_v8 }
 0x2b3   : > { %7749 = shalt.err (!%p7746_p5)
}
 0x2b4   : > { %s7750_s14 = scalar_lea.hbm %s9267_s9, 6144  ;;  %s7754_s24 = scalar_lea.hbm %s9325_s4, 12288 }
 0x2b5   : > { %p7751_p6 = scmp.ne.s32.totalorder %s9267_s9, %s7750_s14  ;;  %p7755_p10 = scmp.lt.u32.totalorder %s9267_s9, %s9325_s4 }
 0x2b6   : > { %p7756_p11 = scmp.lt.u32.totalorder %s7754_s24, %s7750_s14  ;;  %p7758_p13 = scmp.lt.u32.totalorder %s7750_s14, %s9267_s9 }
 0x2b7   : > { %p7752_p7 = pnand %p7751_p6, %p7885_p4 }
 0x2b8   : > { %p7757_p12 = por %p7756_p11, %p7755_p10 }
 0x2b9   : > { %p7753_p9 = pneg %p7752_p7 }
 0x2ba   : > { %p7759_p0 = por %p7758_p13, %p7757_p12 }
 0x2bc   : > { %p7760_p1 = pnand %p7759_p0, %p7753_p9 }
 0x2be   : > { %7763 = shalt.err (!%p7760_p1)
}
 0x2bf   : > { %s7818_s30 = smov 128   ;;  %s7819_s5 = smov 8  }
 0x2c0   : > { %7676 = dma.vmem_to_hbm [thread:$0]  (%p7885_p4), %s9269_s6, 6144, %s9267_s9, %s9275_s18, %s7818_s30, %s7818_s30, %s7819_s5  }
 0x2c1 PF: > { %p7683_p2 = scmp.ge.s32.totalorder %s7814_s20, 2  ;;  %s5635_s7 = sand.u32 1, %s7794_s15  }
 0x2c2   : > { %s5636_s8 = scalar_lea.sflag [#allocation5], %s5635_s7 }
 0x2c3   : > { %p7679_p3 = pnand %p7683_p2, %p7892_p8 }
 0x2c5   : > { %7789 = dma.done.wait (!%p7679_p3), %s5636_s8, 6144  }
 0x2c6   : > { %7791 = vsyncadd (!%p7679_p3), %s5636_s8, 4294961152  ;;  %s17_s20 = sadd.s32 1, %s7814_s20   ;;  %s9442_s15 = smov %s7798_s16 }
 0x2c7   : > { %p14_p5 = scmp.ge.s32.totalorder %s17_s20, 4   ;;  %s9443_s16 = smov %s7802_s17 }
 0x2c8   : > { %s9444_s17 = smov %s7898_s28  ;;  %s9445_s18 = smov %s7810_s19 }
 0x2c9   : > { %s9446_s19 = smov %s9448_s23  ;;  %16 = sbr.rel (!%p14_p5) target bundleno = 4 (0x4), region = 82 }
 0x2d0   :  { %5641 = vsyncpa [#allocation5], 1 }
 0x2d1   :  { %5643 = vsyncpa [#allocation5 + $0x1], 1 }

</bundles_post_ra>
